<compile_context>
chip_gen: v7x
topology: tpu7x:2x2x1
jax: 0.10.0
libtpu: 0.0.40
codegen_flags: <defaults>
</compile_context>

<pallas_src>
import functools

import jax
import jax.numpy as jnp
from jax import lax
from jax.experimental import pallas as pl
from jax.experimental.pallas import tpu as pltpu

HIDDEN = 512       # module's hidden width
OUT_ROWS = 16      # final layer's single output unit padded to 16 rows (row 0 real)


def _round_up(n, m):
    return ((n + m - 1) // m) * m


# ----------------------------- Pallas kernel --------------------------------
def ebm_kernel(x_ref, w1_ref, b1_ref, w2_ref, b2_ref, w3_ref, b3_ref,
               w4_ref, b4_ref, o_ref, *, bf16_epilogue):
    """One batch tile: x (TB, D) f32 -> energies written transposed (16, TB)."""

    def layer(h_bf16, w_ref, b_ref):
        # MXU matmul, f32 accumulation.
        acc = jnp.dot(h_bf16, w_ref[...], preferred_element_type=jnp.float32)
        if bf16_epilogue:
            # v6e/v7x: bias + ReLU on the bf16 VALU (2 elems/lane).
            return jnp.maximum(acc.astype(jnp.bfloat16)
                               + b_ref[...].astype(jnp.bfloat16), 0.0)
        # v5e: f32 epilogue (no bf16 VPU); downcast only for the next matmul.
        return jnp.maximum(acc + b_ref[...], 0.0).astype(jnp.bfloat16)

    h = layer(x_ref[...].astype(jnp.bfloat16), w1_ref, b1_ref)   # D   -> 512
    h = layer(h, w2_ref, b2_ref)                                 # 512 -> 512
    h = layer(h, w3_ref, b3_ref)                                 # 512 -> 512

    # Final 512 -> 1 layer, computed transposed: (16, 512) . (TB, 512)^T ->
    # (16, TB), so the output store is lane-dense along batch (row 0 = energy).
    e = lax.dot_general(w4_ref[...], h, (((1,), (1,)), ((), ())),
                        preferred_element_type=jnp.float32)
    o_ref[...] = jnp.clip(e + b4_ref[...], -1.0, 1.0)


# --------------------------------- wrapper -----------------------------------
def _build_call(kernel, *, n_tiles, TB, D, Bp, weight_mode, flops,
                bytes_accessed):
    H = HIDDEN

    def wspec(shape):
        # Constant index_map => fetched once, VMEM-resident for all tiles.
        if weight_mode is None:
            return pl.BlockSpec(shape, lambda i: (0, 0))
        return pl.BlockSpec(shape, lambda i: (0, 0), pipeline_mode=weight_mode)

    return pl.pallas_call(
        kernel,
        out_shape=jax.ShapeDtypeStruct((OUT_ROWS, Bp), jnp.float32),
        grid=(n_tiles,),
        in_specs=[
            pl.BlockSpec((TB, D), lambda i: (i, 0)),         # x: per batch tile
            wspec((D, H)), wspec((1, H)),                    # w1, b1
            wspec((H, H)), wspec((1, H)),                    # w2, b2
            wspec((H, H)), wspec((1, H)),                    # w3, b3
            wspec((OUT_ROWS, H)), wspec((OUT_ROWS, 1)),      # w4 (padded), b4
        ],
        out_specs=pl.BlockSpec((OUT_ROWS, TB), lambda i: (0, i)),
        compiler_params=pltpu.CompilerParams(
            dimension_semantics=("parallel",),
            vmem_limit_bytes=32 << 20),
        cost_estimate=pl.CostEstimate(
            flops=flops, transcendentals=0, bytes_accessed=bytes_accessed),
    )


def _default_bf16_epilogue():
    """bf16 VALU exists on v6e/v7x; v5e (and older) stays on the f32 path."""
    try:
        kind = jax.devices()[0].device_kind.lower()
    except Exception:
        return False
    return ("v6" in kind) or ("v7" in kind)


def latent_ebm_forward(x, params, *, tb_max=1024, bf16_epilogue=None):
    """x: [B, num_latent] float32.  params: see init_params.  Returns [B, 1]."""
    B, D = x.shape
    H = HIDDEN
    if bf16_epilogue is None:
        bf16_epilogue = _default_bf16_epilogue()

    # Balanced batch tiles (minimal padding waste); force >= 2 tiles once there
    # is enough work so the "parallel" grid axis can split over v7x's 2 TCs.
    n_tiles = max(1, pl.cdiv(B, tb_max))
    if B >= 512:
        n_tiles = max(n_tiles, 2)
    TB = _round_up(pl.cdiv(B, n_tiles), 128 if n_tiles > 1 else 8)
    Bp = TB * n_tiles

    # Pad along batch only (padded rows are zero; they are sliced off below and
    # never reduced over, so nonzero trained biases stay harmless).
    xp = x if Bp == B else jnp.pad(x, ((0, Bp - B), (0, 0)))

    flops = 2 * Bp * (D * H + H * H + H * H + H * OUT_ROWS)
    bytes_accessed = (
        xp.size * xp.dtype.itemsize
        + sum(int(params[k].size) * params[k].dtype.itemsize
              for k in ("w1", "w2", "w3", "w4", "b1", "b2", "b3", "b4"))
        + OUT_ROWS * Bp * 4)

    kernel = functools.partial(ebm_kernel, bf16_epilogue=bool(bf16_epilogue))
    args = (xp, params["w1"], params["b1"], params["w2"], params["b2"],
            params["w3"], params["b3"], params["w4"], params["b4"])
    common = dict(n_tiles=n_tiles, TB=TB, D=D, Bp=Bp,
                  flops=flops, bytes_accessed=bytes_accessed)
    try:
        # Weights/biases have constant index_maps and are never revisited:
        # single-buffer them, dropping the unused second pipeline buffer.
        out = _build_call(kernel, weight_mode=pl.Buffered(1), **common)(*args)
    except Exception:
        # Fallback for JAX builds without BlockSpec.pipeline_mode support.
        out = _build_call(kernel, weight_mode=None, **common)(*args)

    # Row 0 holds the real energies; drop batch padding -> (B, 1).
    return out[0, :B][:, None]


# --------------------------- parameter setup (glue) --------------------------
def _l2_normalize(v, eps=1e-12):
    return v / (jnp.linalg.norm(v) + eps)


def _spectral_normalize(w, u):
    """PyTorch spectral_norm with n_power_iterations=1 (eval-mode one-shot).
    w: [out, in], u: [out].  Returns w / sigma."""
    v = _l2_normalize(w.T @ u)      # [in]
    u_new = _l2_normalize(w @ v)    # [out]
    sigma = u_new @ (w @ v)
    return w / sigma


def init_params(key, num_latent, hidden=HIDDEN):
    """Returns (kernel_params, ref_params).

    kernel_params: bf16 [in, out] weights for layers 1-3; w4 kept [out, in]
                   zero-padded to OUT_ROWS rows (row 0 real) for the
                   transposed final matmul; f32 biases.
    ref_params:    f32 unpadded [in, out] weights + (1, out) biases.
    """
    dims = [(hidden, num_latent), (hidden, hidden), (hidden, hidden), (1, hidden)]
    kernel_params, ref_params = {}, {}
    keys = jax.random.split(key, 2 * len(dims))
    for i, (out_d, in_d) in enumerate(dims):
        kw, ku = keys[2 * i], keys[2 * i + 1]
        # initialize_weights: normal(0, 0.02) weights, zero biases.
        w = 0.02 * jax.random.normal(kw, (out_d, in_d), dtype=jnp.float32)
        u = _l2_normalize(jax.random.normal(ku, (out_d,), dtype=jnp.float32))
        w_sn = _spectral_normalize(w, u)                 # [out, in] f32
        b = jnp.zeros((1, out_d), jnp.float32)

        ref_params[f"w{i + 1}"] = w_sn.T                 # [in, out] f32
        ref_params[f"b{i + 1}"] = b

        if i < len(dims) - 1:
            kernel_params[f"w{i + 1}"] = w_sn.T.astype(jnp.bfloat16)
            kernel_params[f"b{i + 1}"] = b               # (1, out) f32
        else:
            # Final layer stays [out, in], padded to OUT_ROWS rows so the
            # kernel can emit lane-dense transposed energies (row 0 is real).
            w4 = jnp.zeros((OUT_ROWS, in_d), jnp.float32).at[:out_d, :].set(w_sn)
            b4 = jnp.zeros((OUT_ROWS, 1), jnp.float32).at[:out_d, 0].set(b[0])
            kernel_params[f"w{i + 1}"] = w4.astype(jnp.bfloat16)
            kernel_params[f"b{i + 1}"] = b4
    return kernel_params, ref_params


def ref_forward(x, ref_params):
    """Pure-JAX f32 reference (exact module semantics)."""
    h = x
    for i in range(1, 4):
        h = jnp.maximum(h @ ref_params[f"w{i}"] + ref_params[f"b{i}"], 0.0)
    return jnp.clip(h @ ref_params["w4"] + ref_params["b4"], -1.0, 1.0)


# --------------------------------- main --------------------------------------
if __name__ == "__main__":
    key = jax.random.PRNGKey(0)
    k_x, k_p = jax.random.split(key)

    batch = 8
    num_latent = 32

    x = jax.random.normal(k_x, (batch, num_latent), dtype=jnp.float32)
    kernel_params, ref_params = init_params(k_p, num_latent)

    out = latent_ebm_forward(x, kernel_params)
    out = jax.block_until_ready(out)

    ref = ref_forward(x, ref_params)
    assert out.shape == (batch, 1), out.shape
    # bf16 weights/activations on the MXU => loosened tolerance vs f32 ref
    # (intentional precision tradeoff; fine for EBM energies).
    assert jnp.allclose(out, ref, atol=3e-2, rtol=3e-2), \
        float(jnp.max(jnp.abs(out - ref)))

    print("KERNEL_OK")
</pallas_src>

<mosaic_0001>
module attributes {stable_mosaic.version = 11 : i64} {
  func.func @ebm_kernel(%arg0: i32, %arg1: memref<8x32xf32, #tpu.memory_space<vmem>>, %arg2: memref<32x512xbf16, #tpu.memory_space<vmem>>, %arg3: memref<1x512xf32, #tpu.memory_space<vmem>>, %arg4: memref<512x512xbf16, #tpu.memory_space<vmem>>, %arg5: memref<1x512xf32, #tpu.memory_space<vmem>>, %arg6: memref<512x512xbf16, #tpu.memory_space<vmem>>, %arg7: memref<1x512xf32, #tpu.memory_space<vmem>>, %arg8: memref<16x512xbf16, #tpu.memory_space<vmem>>, %arg9: memref<16x1xf32, #tpu.memory_space<vmem>>, %arg10: memref<16x8xf32, #tpu.memory_space<vmem>>) attributes {dimension_semantics = [#tpu.dimension_semantics<parallel>], iteration_bounds = array<i64: 1>, scalar_prefetch = 0 : i64, scratch_operands = 0 : i64, tpu.core_type = #tpu.core_type<tc>, window_params = [{transform_indices = @transform_0, window_bounds = array<i64: 8, 32>}, {pipeline_mode = #tpu.pipeline_mode<synchronous>, transform_indices = @transform_1, window_bounds = array<i64: 32, 512>}, {pipeline_mode = #tpu.pipeline_mode<synchronous>, transform_indices = @transform_2, window_bounds = array<i64: 1, 512>}, {pipeline_mode = #tpu.pipeline_mode<synchronous>, transform_indices = @transform_3, window_bounds = array<i64: 512, 512>}, {pipeline_mode = #tpu.pipeline_mode<synchronous>, transform_indices = @transform_4, window_bounds = array<i64: 1, 512>}, {pipeline_mode = #tpu.pipeline_mode<synchronous>, transform_indices = @transform_5, window_bounds = array<i64: 512, 512>}, {pipeline_mode = #tpu.pipeline_mode<synchronous>, transform_indices = @transform_6, window_bounds = array<i64: 1, 512>}, {pipeline_mode = #tpu.pipeline_mode<synchronous>, transform_indices = @transform_7, window_bounds = array<i64: 16, 512>}, {pipeline_mode = #tpu.pipeline_mode<synchronous>, transform_indices = @transform_8, window_bounds = array<i64: 16, 1>}, {transform_indices = @transform_9, window_bounds = array<i64: 16, 8>}]} {
    %c0 = arith.constant 0 : index
    %c0_0 = arith.constant 0 : index
    %0 = vector.load %arg1[%c0, %c0_0] : memref<8x32xf32, #tpu.memory_space<vmem>>, vector<8x32xf32>
    %1 = arith.truncf %0 : vector<8x32xf32> to vector<8x32xbf16>
    %c0_1 = arith.constant 0 : index
    %c0_2 = arith.constant 0 : index
    %2 = vector.load %arg2[%c0_1, %c0_2] : memref<32x512xbf16, #tpu.memory_space<vmem>>, vector<32x512xbf16>
    %cst = arith.constant dense<0.000000e+00> : vector<8x512xf32>
    %3 = tpu.matmul %1, %2, %cst {dimension_numbers = #tpu.dot_dimension_numbers<[1], [0], [0], [1], [0, 0, 1, 1], [], []>} : vector<8x32xbf16>, vector<32x512xbf16>, vector<8x512xf32> -> vector<8x512xf32>
    %c0_3 = arith.constant 0 : index
    %c0_4 = arith.constant 0 : index
    %4 = vector.load %arg3[%c0_3, %c0_4] : memref<1x512xf32, #tpu.memory_space<vmem>>, vector<1x512xf32>
    %5 = vector.broadcast %4 : vector<1x512xf32> to vector<8x512xf32>
    %6 = arith.addf %3, %5 : vector<8x512xf32>
    %cst_5 = arith.constant 0.000000e+00 : f32
    %7 = vector.broadcast %cst_5 : f32 to vector<8x512xf32>
    %8 = arith.maximumf %6, %7 : vector<8x512xf32>
    %9 = arith.truncf %8 : vector<8x512xf32> to vector<8x512xbf16>
    %c0_6 = arith.constant 0 : index
    %c0_7 = arith.constant 0 : index
    %10 = vector.load %arg4[%c0_6, %c0_7] : memref<512x512xbf16, #tpu.memory_space<vmem>>, vector<512x512xbf16>
    %cst_8 = arith.constant dense<0.000000e+00> : vector<8x512xf32>
    %11 = tpu.matmul %9, %10, %cst_8 {dimension_numbers = #tpu.dot_dimension_numbers<[1], [0], [0], [1], [0, 0, 1, 1], [], []>} : vector<8x512xbf16>, vector<512x512xbf16>, vector<8x512xf32> -> vector<8x512xf32>
    %c0_9 = arith.constant 0 : index
    %c0_10 = arith.constant 0 : index
    %12 = vector.load %arg5[%c0_9, %c0_10] : memref<1x512xf32, #tpu.memory_space<vmem>>, vector<1x512xf32>
    %13 = vector.broadcast %12 : vector<1x512xf32> to vector<8x512xf32>
    %14 = arith.addf %11, %13 : vector<8x512xf32>
    %cst_11 = arith.constant 0.000000e+00 : f32
    %15 = vector.broadcast %cst_11 : f32 to vector<8x512xf32>
    %16 = arith.maximumf %14, %15 : vector<8x512xf32>
    %17 = arith.truncf %16 : vector<8x512xf32> to vector<8x512xbf16>
    %c0_12 = arith.constant 0 : index
    %c0_13 = arith.constant 0 : index
    %18 = vector.load %arg6[%c0_12, %c0_13] : memref<512x512xbf16, #tpu.memory_space<vmem>>, vector<512x512xbf16>
    %cst_14 = arith.constant dense<0.000000e+00> : vector<8x512xf32>
    %19 = tpu.matmul %17, %18, %cst_14 {dimension_numbers = #tpu.dot_dimension_numbers<[1], [0], [0], [1], [0, 0, 1, 1], [], []>} : vector<8x512xbf16>, vector<512x512xbf16>, vector<8x512xf32> -> vector<8x512xf32>
    %c0_15 = arith.constant 0 : index
    %c0_16 = arith.constant 0 : index
    %20 = vector.load %arg7[%c0_15, %c0_16] : memref<1x512xf32, #tpu.memory_space<vmem>>, vector<1x512xf32>
    %21 = vector.broadcast %20 : vector<1x512xf32> to vector<8x512xf32>
    %22 = arith.addf %19, %21 : vector<8x512xf32>
    %cst_17 = arith.constant 0.000000e+00 : f32
    %23 = vector.broadcast %cst_17 : f32 to vector<8x512xf32>
    %24 = arith.maximumf %22, %23 : vector<8x512xf32>
    %25 = arith.truncf %24 : vector<8x512xf32> to vector<8x512xbf16>
    %c0_18 = arith.constant 0 : index
    %c0_19 = arith.constant 0 : index
    %26 = vector.load %arg8[%c0_18, %c0_19] : memref<16x512xbf16, #tpu.memory_space<vmem>>, vector<16x512xbf16>
    %cst_20 = arith.constant dense<0.000000e+00> : vector<16x8xf32>
    %27 = tpu.matmul %26, %25, %cst_20 {dimension_numbers = #tpu.dot_dimension_numbers<[1], [1], [0], [0], [0, 0, 1, 0], [], []>} : vector<16x512xbf16>, vector<8x512xbf16>, vector<16x8xf32> -> vector<16x8xf32>
    %c0_21 = arith.constant 0 : index
    %c0_22 = arith.constant 0 : index
    %28 = vector.load %arg9[%c0_21, %c0_22] : memref<16x1xf32, #tpu.memory_space<vmem>>, vector<16x1xf32>
    %29 = vector.broadcast %28 : vector<16x1xf32> to vector<16x8xf32>
    %30 = arith.addf %27, %29 : vector<16x8xf32>
    %cst_23 = arith.constant -1.000000e+00 : f32
    %cst_24 = arith.constant 1.000000e+00 : f32
    %31 = vector.broadcast %cst_23 : f32 to vector<16x8xf32>
    %32 = arith.maximumf %31, %30 : vector<16x8xf32>
    %33 = vector.broadcast %cst_24 : f32 to vector<16x8xf32>
    %34 = arith.minimumf %33, %32 : vector<16x8xf32>
    %c0_25 = arith.constant 0 : index
    %c0_26 = arith.constant 0 : index
    %35 = vector.load %arg10[%c0_25, %c0_26] : memref<16x8xf32, #tpu.memory_space<vmem>>, vector<16x8xf32>
    tpu.vector_store %arg10[%c0_25, %c0_26], %34 {strides = array<i32>} : memref<16x8xf32, #tpu.memory_space<vmem>>, vector<16x8xf32>,
    return
  }
  func.func @transform_0(%arg0: i32) -> (i32, i32) {
    %c0_i32 = arith.constant 0 : i32
    %c0_i32_0 = arith.constant 0 : i32
    return %arg0, %c0_i32 : i32, i32
  }
  func.func @transform_1(%arg0: i32) -> (i32, i32) {
    %c0_i32 = arith.constant 0 : i32
    %c0_i32_0 = arith.constant 0 : i32
    %c0_i32_1 = arith.constant 0 : i32
    return %c0_i32, %c0_i32_0 : i32, i32
  }
  func.func @transform_2(%arg0: i32) -> (i32, i32) {
    %c0_i32 = arith.constant 0 : i32
    %c0_i32_0 = arith.constant 0 : i32
    %c0_i32_1 = arith.constant 0 : i32
    return %c0_i32, %c0_i32_0 : i32, i32
  }
  func.func @transform_3(%arg0: i32) -> (i32, i32) {
    %c0_i32 = arith.constant 0 : i32
    %c0_i32_0 = arith.constant 0 : i32
    %c0_i32_1 = arith.constant 0 : i32
    return %c0_i32, %c0_i32_0 : i32, i32
  }
  func.func @transform_4(%arg0: i32) -> (i32, i32) {
    %c0_i32 = arith.constant 0 : i32
    %c0_i32_0 = arith.constant 0 : i32
    %c0_i32_1 = arith.constant 0 : i32
    return %c0_i32, %c0_i32_0 : i32, i32
  }
  func.func @transform_5(%arg0: i32) -> (i32, i32) {
    %c0_i32 = arith.constant 0 : i32
    %c0_i32_0 = arith.constant 0 : i32
    %c0_i32_1 = arith.constant 0 : i32
    return %c0_i32, %c0_i32_0 : i32, i32
  }
  func.func @transform_6(%arg0: i32) -> (i32, i32) {
    %c0_i32 = arith.constant 0 : i32
    %c0_i32_0 = arith.constant 0 : i32
    %c0_i32_1 = arith.constant 0 : i32
    return %c0_i32, %c0_i32_0 : i32, i32
  }
  func.func @transform_7(%arg0: i32) -> (i32, i32) {
    %c0_i32 = arith.constant 0 : i32
    %c0_i32_0 = arith.constant 0 : i32
    %c0_i32_1 = arith.constant 0 : i32
    return %c0_i32, %c0_i32_0 : i32, i32
  }
  func.func @transform_8(%arg0: i32) -> (i32, i32) {
    %c0_i32 = arith.constant 0 : i32
    %c0_i32_0 = arith.constant 0 : i32
    %c0_i32_1 = arith.constant 0 : i32
    return %c0_i32, %c0_i32_0 : i32, i32
  }
  func.func @transform_9(%arg0: i32) -> (i32, i32) {
    %c0_i32 = arith.constant 0 : i32
    %c0_i32_0 = arith.constant 0 : i32
    return %c0_i32, %arg0 : i32, i32
  }
}

module attributes {stable_mosaic.version = 11 : i64} {
  func.func @ebm_kernel(%arg0: i32, %arg1: memref<8x32xf32, #tpu.memory_space<vmem>>, %arg2: memref<32x512xbf16, #tpu.memory_space<vmem>>, %arg3: memref<1x512xf32, #tpu.memory_space<vmem>>, %arg4: memref<512x512xbf16, #tpu.memory_space<vmem>>, %arg5: memref<1x512xf32, #tpu.memory_space<vmem>>, %arg6: memref<512x512xbf16, #tpu.memory_space<vmem>>, %arg7: memref<1x512xf32, #tpu.memory_space<vmem>>, %arg8: memref<16x512xbf16, #tpu.memory_space<vmem>>, %arg9: memref<16x1xf32, #tpu.memory_space<vmem>>, %arg10: memref<16x8xf32, #tpu.memory_space<vmem>>) attributes {dimension_semantics = [#tpu.dimension_semantics<parallel>], iteration_bounds = array<i64: 1>, scalar_prefetch = 0 : i64, scratch_operands = 0 : i64, tpu.core_type = #tpu.core_type<tc>, window_params = [{transform_indices = @transform_0, window_bounds = array<i64: 8, 32>}, {pipeline_mode = #tpu.pipeline_mode<synchronous>, transform_indices = @transform_1, window_bounds = array<i64: 32, 512>}, {pipeline_mode = #tpu.pipeline_mode<synchronous>, transform_indices = @transform_2, window_bounds = array<i64: 1, 512>}, {pipeline_mode = #tpu.pipeline_mode<synchronous>, transform_indices = @transform_3, window_bounds = array<i64: 512, 512>}, {pipeline_mode = #tpu.pipeline_mode<synchronous>, transform_indices = @transform_4, window_bounds = array<i64: 1, 512>}, {pipeline_mode = #tpu.pipeline_mode<synchronous>, transform_indices = @transform_5, window_bounds = array<i64: 512, 512>}, {pipeline_mode = #tpu.pipeline_mode<synchronous>, transform_indices = @transform_6, window_bounds = array<i64: 1, 512>}, {pipeline_mode = #tpu.pipeline_mode<synchronous>, transform_indices = @transform_7, window_bounds = array<i64: 16, 512>}, {pipeline_mode = #tpu.pipeline_mode<synchronous>, transform_indices = @transform_8, window_bounds = array<i64: 16, 1>}, {transform_indices = @transform_9, window_bounds = array<i64: 16, 8>}]} {
    %c0 = arith.constant 0 : index
    %c0_0 = arith.constant 0 : index
    %0 = vector.load %arg1[%c0, %c0_0] : memref<8x32xf32, #tpu.memory_space<vmem>>, vector<8x32xf32>
    %1 = arith.truncf %0 : vector<8x32xf32> to vector<8x32xbf16>
    %c0_1 = arith.constant 0 : index
    %c0_2 = arith.constant 0 : index
    %2 = vector.load %arg2[%c0_1, %c0_2] : memref<32x512xbf16, #tpu.memory_space<vmem>>, vector<32x512xbf16>
    %cst = arith.constant dense<0.000000e+00> : vector<8x512xf32>
    %3 = tpu.matmul %1, %2, %cst {dimension_numbers = #tpu.dot_dimension_numbers<[1], [0], [0], [1], [0, 0, 1, 1], [], []>} : vector<8x32xbf16>, vector<32x512xbf16>, vector<8x512xf32> -> vector<8x512xf32>
    %c0_3 = arith.constant 0 : index
    %c0_4 = arith.constant 0 : index
    %4 = vector.load %arg3[%c0_3, %c0_4] : memref<1x512xf32, #tpu.memory_space<vmem>>, vector<1x512xf32>
    %5 = vector.broadcast %4 : vector<1x512xf32> to vector<8x512xf32>
    %6 = arith.addf %3, %5 : vector<8x512xf32>
    %cst_5 = arith.constant 0.000000e+00 : f32
    %7 = vector.broadcast %cst_5 : f32 to vector<8x512xf32>
    %8 = arith.maximumf %6, %7 : vector<8x512xf32>
    %9 = arith.truncf %8 : vector<8x512xf32> to vector<8x512xbf16>
    %c0_6 = arith.constant 0 : index
    %c0_7 = arith.constant 0 : index
    %10 = vector.load %arg4[%c0_6, %c0_7] : memref<512x512xbf16, #tpu.memory_space<vmem>>, vector<512x512xbf16>
    %cst_8 = arith.constant dense<0.000000e+00> : vector<8x512xf32>
    %11 = tpu.matmul %9, %10, %cst_8 {dimension_numbers = #tpu.dot_dimension_numbers<[1], [0], [0], [1], [0, 0, 1, 1], [], []>} : vector<8x512xbf16>, vector<512x512xbf16>, vector<8x512xf32> -> vector<8x512xf32>
    %c0_9 = arith.constant 0 : index
    %c0_10 = arith.constant 0 : index
    %12 = vector.load %arg5[%c0_9, %c0_10] : memref<1x512xf32, #tpu.memory_space<vmem>>, vector<1x512xf32>
    %13 = vector.broadcast %12 : vector<1x512xf32> to vector<8x512xf32>
    %14 = arith.addf %11, %13 : vector<8x512xf32>
    %cst_11 = arith.constant 0.000000e+00 : f32
    %15 = vector.broadcast %cst_11 : f32 to vector<8x512xf32>
    %16 = arith.maximumf %14, %15 : vector<8x512xf32>
    %17 = arith.truncf %16 : vector<8x512xf32> to vector<8x512xbf16>
    %c0_12 = arith.constant 0 : index
    %c0_13 = arith.constant 0 : index
    %18 = vector.load %arg6[%c0_12, %c0_13] : memref<512x512xbf16, #tpu.memory_space<vmem>>, vector<512x512xbf16>
    %cst_14 = arith.constant dense<0.000000e+00> : vector<8x512xf32>
    %19 = tpu.matmul %17, %18, %cst_14 {dimension_numbers = #tpu.dot_dimension_numbers<[1], [0], [0], [1], [0, 0, 1, 1], [], []>} : vector<8x512xbf16>, vector<512x512xbf16>, vector<8x512xf32> -> vector<8x512xf32>
    %c0_15 = arith.constant 0 : index
    %c0_16 = arith.constant 0 : index
    %20 = vector.load %arg7[%c0_15, %c0_16] : memref<1x512xf32, #tpu.memory_space<vmem>>, vector<1x512xf32>
    %21 = vector.broadcast %20 : vector<1x512xf32> to vector<8x512xf32>
    %22 = arith.addf %19, %21 : vector<8x512xf32>
    %cst_17 = arith.constant 0.000000e+00 : f32
    %23 = vector.broadcast %cst_17 : f32 to vector<8x512xf32>
    %24 = arith.maximumf %22, %23 : vector<8x512xf32>
    %25 = arith.truncf %24 : vector<8x512xf32> to vector<8x512xbf16>
    %c0_18 = arith.constant 0 : index
    %c0_19 = arith.constant 0 : index
    %26 = vector.load %arg8[%c0_18, %c0_19] : memref<16x512xbf16, #tpu.memory_space<vmem>>, vector<16x512xbf16>
    %cst_20 = arith.constant dense<0.000000e+00> : vector<16x8xf32>
    %27 = tpu.matmul %26, %25, %cst_20 {dimension_numbers = #tpu.dot_dimension_numbers<[1], [1], [0], [0], [0, 0, 1, 0], [], []>} : vector<16x512xbf16>, vector<8x512xbf16>, vector<16x8xf32> -> vector<16x8xf32>
    %c0_21 = arith.constant 0 : index
    %c0_22 = arith.constant 0 : index
    %28 = vector.load %arg9[%c0_21, %c0_22] : memref<16x1xf32, #tpu.memory_space<vmem>>, vector<16x1xf32>
    %29 = vector.broadcast %28 : vector<16x1xf32> to vector<16x8xf32>
    %30 = arith.addf %27, %29 : vector<16x8xf32>
    %cst_23 = arith.constant -1.000000e+00 : f32
    %cst_24 = arith.constant 1.000000e+00 : f32
    %31 = vector.broadcast %cst_23 : f32 to vector<16x8xf32>
    %32 = arith.maximumf %31, %30 : vector<16x8xf32>
    %33 = vector.broadcast %cst_24 : f32 to vector<16x8xf32>
    %34 = arith.minimumf %33, %32 : vector<16x8xf32>
    %c0_25 = arith.constant 0 : index
    %c0_26 = arith.constant 0 : index
    %35 = vector.load %arg10[%c0_25, %c0_26] : memref<16x8xf32, #tpu.memory_space<vmem>>, vector<16x8xf32>
    tpu.vector_store %arg10[%c0_25, %c0_26], %34 {strides = array<i32>} : memref<16x8xf32, #tpu.memory_space<vmem>>, vector<16x8xf32>,
    return
  }
  func.func @transform_0(%arg0: i32) -> (i32, i32) {
    %c0_i32 = arith.constant 0 : i32
    %c0_i32_0 = arith.constant 0 : i32
    return %arg0, %c0_i32 : i32, i32
  }
  func.func @transform_1(%arg0: i32) -> (i32, i32) {
    %c0_i32 = arith.constant 0 : i32
    %c0_i32_0 = arith.constant 0 : i32
    %c0_i32_1 = arith.constant 0 : i32
    return %c0_i32, %c0_i32_0 : i32, i32
  }
  func.func @transform_2(%arg0: i32) -> (i32, i32) {
    %c0_i32 = arith.constant 0 : i32
    %c0_i32_0 = arith.constant 0 : i32
    %c0_i32_1 = arith.constant 0 : i32
    return %c0_i32, %c0_i32_0 : i32, i32
  }
  func.func @transform_3(%arg0: i32) -> (i32, i32) {
    %c0_i32 = arith.constant 0 : i32
    %c0_i32_0 = arith.constant 0 : i32
    %c0_i32_1 = arith.constant 0 : i32
    return %c0_i32, %c0_i32_0 : i32, i32
  }
  func.func @transform_4(%arg0: i32) -> (i32, i32) {
    %c0_i32 = arith.constant 0 : i32
    %c0_i32_0 = arith.constant 0 : i32
    %c0_i32_1 = arith.constant 0 : i32
    return %c0_i32, %c0_i32_0 : i32, i32
  }
  func.func @transform_5(%arg0: i32) -> (i32, i32) {
    %c0_i32 = arith.constant 0 : i32
    %c0_i32_0 = arith.constant 0 : i32
    %c0_i32_1 = arith.constant 0 : i32
    return %c0_i32, %c0_i32_0 : i32, i32
  }
  func.func @transform_6(%arg0: i32) -> (i32, i32) {
    %c0_i32 = arith.constant 0 : i32
    %c0_i32_0 = arith.constant 0 : i32
    %c0_i32_1 = arith.constant 0 : i32
    return %c0_i32, %c0_i32_0 : i32, i32
  }
  func.func @transform_7(%arg0: i32) -> (i32, i32) {
    %c0_i32 = arith.constant 0 : i32
    %c0_i32_0 = arith.constant 0 : i32
    %c0_i32_1 = arith.constant 0 : i32
    return %c0_i32, %c0_i32_0 : i32, i32
  }
  func.func @transform_8(%arg0: i32) -> (i32, i32) {
    %c0_i32 = arith.constant 0 : i32
    %c0_i32_0 = arith.constant 0 : i32
    %c0_i32_1 = arith.constant 0 : i32
    return %c0_i32, %c0_i32_0 : i32, i32
  }
  func.func @transform_9(%arg0: i32) -> (i32, i32) {
    %c0_i32 = arith.constant 0 : i32
    %c0_i32_0 = arith.constant 0 : i32
    return %c0_i32, %arg0 : i32, i32
  }
}

</mosaic_0001>

<bundles_post_ra>
// kernel: tpu_custom_call.1
= control target key start
LH: loop header
LB: loop body
LE: loop exit
PB: predicated region body
PF: predicated region fallthrough
CT: control target
= control target key end

     0   :  { %14 = vsyncpa [#allocation3], 0  ;;  %s3399_s0 = inlined_call_operand.vmem [shape: f32[8,32], index: 0, kind: input, shape index: {}]   ;;  %s3400_s1 = inlined_call_operand.hbm [shape: bf16[32,512], index: 1, kind: input, shape index: {}]   ;;  %s3401_s2 = inlined_call_operand.hbm [shape: f32[1,512], index: 2, kind: input, shape index: {}]   ;;  %s3402_s3 = inlined_call_operand.hbm [shape: bf16[512,512], index: 3, kind: input, shape index: {}]   ;;  %s3403_s4 = inlined_call_operand.hbm [shape: f32[1,512], index: 4, kind: input, shape index: {}]   ;;  %s3404_s5 = inlined_call_operand.hbm [shape: bf16[512,512], index: 5, kind: input, shape index: {}]   ;;  %s3405_s6 = inlined_call_operand.hbm [shape: f32[1,512], index: 6, kind: input, shape index: {}]   ;;  %s3406_s7 = inlined_call_operand.vmem [shape: bf16[16,512], index: 7, kind: input, shape index: {}]   ;;  %s3407_s8 = inlined_call_operand.vmem [shape: f32[16,1], index: 8, kind: input, shape index: {}]   ;;  %s3408_s9 = inlined_call_operand.vmem [shape: f32[16,8], index: 9, kind: output, shape index: {}]  }
   0x1   :  { %15 = vsyncpa [#allocation5], 0 }
   0x2   :  { %16 = vsyncpa [#allocation8], 0 }
   0x3   :  { %17 = vsyncpa [#allocation11], 0  ;;  %s3186_s30 = smov [#allocation4]   ;;  %s3187_s11 = smov [#allocation7]  }
   0x4   :  { %s38_s10 = sshll.u32 %s3186_s30, 4  ;;  %s60_s12 = sshll.u32 %s3187_s11, 4  ;;  %s39_s10 = int_to_ptr.vmem [resolvable:$true] %s38_s10  ;;  %s61_s12 = int_to_ptr.vmem [resolvable:$true] %s60_s12 }
   0x5   :  { %s3046_s15 = scalar_lea.hbm %s3401_s2, 64 }
   0x6   :  { %p3047_p0 = scmp.ne.s32.totalorder %s3401_s2, %s3046_s15  ;;  %p3050_p1 = scmp.lt.u32.totalorder %s3046_s15, %s3401_s2 }
   0x8   :  { %p3052_p2 = pnand %p3050_p1, %p3047_p0 }
   0xa   :  { %3055 = shalt.err (!%p3052_p2)
}
   0xb   :  { %s3056_s20 = scalar_lea.vmem %s39_s10, 64  ;;  %p3061_p4 = scmp.lt.s32.totalorder %s39_s10, %s39_s10 }
   0xc   :  { %p3057_p3 = scmp.ne.s32.totalorder %s39_s10, %s3056_s20  ;;  %p3062_p5 = scmp.lt.s32.totalorder %s3056_s20, %s3056_s20 }
   0xe   :  { %p3063_p6 = por %p3062_p5, %p3061_p4 }
  0x10   :  { %p3064_p7 = pnand %p3063_p6, %p3057_p3 }
  0x12   :  { %3067 = shalt.err (!%p3064_p7)
}
  0x13   :  { %41 = dma.hbm_to_vmem [thread:$0]  %s3401_s2, 64, %s39_s10, [#allocation5]  }
  0x14   :  { %s3068_s25 = scalar_lea.hbm %s3403_s4, 64 }
  0x15   :  { %p3069_p8 = scmp.ne.s32.totalorder %s3403_s4, %s3068_s25  ;;  %p3072_p9 = scmp.lt.u32.totalorder %s3068_s25, %s3403_s4 }
  0x17   :  { %p3074_p10 = pnand %p3072_p9, %p3069_p8 }
  0x19   :  { %3077 = shalt.err (!%p3074_p10)
}
  0x1a   :  { %s3078_s30 = scalar_lea.vmem %s61_s12, 64  ;;  %p3083_p12 = scmp.lt.s32.totalorder %s61_s12, %s61_s12 }
  0x1b   :  { %p3079_p11 = scmp.ne.s32.totalorder %s61_s12, %s3078_s30  ;;  %p3084_p13 = scmp.lt.s32.totalorder %s3078_s30, %s3078_s30 }
  0x1d   :  { %p3085_p0 = por %p3084_p13, %p3083_p12 }
  0x1f   :  { %p3086_p1 = pnand %p3085_p0, %p3079_p11 }
  0x21   :  { %3089 = shalt.err (!%p3086_p1)
}
  0x22   :  { %63 = dma.hbm_to_vmem [thread:$0]  %s3403_s4, 64, %s61_s12, [#allocation8]  }
  0x23   :  { %s3188_s11 = smov [#allocation2]   ;;  %s3090_s16 = scalar_lea.hbm %s3400_s1, 1024 }
  0x24   :  { %s25_s13 = sshll.u32 %s3188_s11, 4  ;;  %p3091_p2 = scmp.ne.s32.totalorder %s3400_s1, %s3090_s16  ;;  %s26_s13 = int_to_ptr.vmem [resolvable:$true] %s25_s13 }
  0x25   :  { %p3094_p3 = scmp.lt.u32.totalorder %s3090_s16, %s3400_s1 }
  0x27   :  { %p3096_p4 = pnand %p3094_p3, %p3091_p2 }
  0x29   :  { %3099 = shalt.err (!%p3096_p4)
}
  0x2a   :  { %s3100_s21 = scalar_lea.vmem %s26_s13, 1024  ;;  %p3105_p6 = scmp.lt.s32.totalorder %s26_s13, %s26_s13 }
  0x2b   :  { %p3101_p5 = scmp.ne.s32.totalorder %s26_s13, %s3100_s21  ;;  %p3106_p7 = scmp.lt.s32.totalorder %s3100_s21, %s3100_s21 }
  0x2d   :  { %p3107_p8 = por %p3106_p7, %p3105_p6 }
  0x2f   :  { %p3108_p9 = pnand %p3107_p8, %p3101_p5 }
  0x31   :  { %3111 = shalt.err (!%p3108_p9)
}
  0x32   :  { %s3189_s4 = smov 256   ;;  %s3190_s12 = smov 16  }
  0x33   :  { %31 = dma.hbm_to_vmem [thread:$0]  %s3400_s1, 1024, %s26_s13, [#allocation3], %s3189_s4, %s3189_s4, %s3190_s12  }
  0x34   :  { %s3191_s24 = smov [#allocation6]   ;;  %s3192_s26 = smov [#allocation9]  }
  0x35   :  { %s47_s25 = sshll.u32 %s3191_s24, 4  ;;  %s69_s27 = sshll.u32 %s3192_s26, 4  ;;  %s48_s25 = int_to_ptr.vmem [resolvable:$true] %s47_s25  ;;  %s70_s27 = int_to_ptr.vmem [resolvable:$true] %s69_s27 }
  0x36   :  { %s3112_s30 = scalar_lea.hbm %s3402_s3, 16384 }
  0x37   :  { %p3113_p10 = scmp.ne.s32.totalorder %s3402_s3, %s3112_s30  ;;  %p3116_p11 = scmp.lt.u32.totalorder %s3112_s30, %s3402_s3 }
  0x39   :  { %p3118_p12 = pnand %p3116_p11, %p3113_p10 }
  0x3b   :  { %3121 = shalt.err (!%p3118_p12)
}
  0x3c   :  { %s3122_s1 = scalar_lea.vmem %s48_s25, 16384  ;;  %p3127_p0 = scmp.lt.s32.totalorder %s48_s25, %s48_s25 }
  0x3d   :  { %p3123_p13 = scmp.ne.s32.totalorder %s48_s25, %s3122_s1  ;;  %p3128_p1 = scmp.lt.s32.totalorder %s3122_s1, %s3122_s1 }
  0x3f   :  { %p3129_p2 = por %p3128_p1, %p3127_p0 }
  0x41   :  { %p3130_p3 = pnand %p3129_p2, %p3123_p13 }
  0x43   :  { %3133 = shalt.err (!%p3130_p3)
}
  0x44   :  { %53 = dma.hbm_to_vmem [thread:$0]  %s3402_s3, 16384, %s48_s25, [#allocation5], %s3189_s4, %s3189_s4, %s3190_s12  }
  0x45   :  { %s3134_s18 = scalar_lea.hbm %s3404_s5, 16384 }
  0x46   :  { %p3135_p4 = scmp.ne.s32.totalorder %s3404_s5, %s3134_s18  ;;  %p3138_p5 = scmp.lt.u32.totalorder %s3134_s18, %s3404_s5 }
  0x48   :  { %p3140_p6 = pnand %p3138_p5, %p3135_p4 }
  0x4a   :  { %3143 = shalt.err (!%p3140_p6)
}
  0x4b   :  { %s3144_s23 = scalar_lea.vmem %s70_s27, 16384  ;;  %p3149_p8 = scmp.lt.s32.totalorder %s70_s27, %s70_s27 }
  0x4c   :  { %p3145_p7 = scmp.ne.s32.totalorder %s70_s27, %s3144_s23  ;;  %p3150_p9 = scmp.lt.s32.totalorder %s3144_s23, %s3144_s23 }
  0x4e   :  { %p3151_p10 = por %p3150_p9, %p3149_p8 }
  0x50   :  { %p3152_p11 = pnand %p3151_p10, %p3145_p7 }
  0x52   :  { %3155 = shalt.err (!%p3152_p11)
}
  0x53   :  { %75 = dma.hbm_to_vmem [thread:$0]  %s3404_s5, 16384, %s70_s27, [#allocation8], %s3189_s4, %s3189_s4, %s3190_s12  }
  0x54   :  { %s3193_s25 = smov [#allocation10]   ;;  %s3156_s30 = scalar_lea.hbm %s3405_s6, 64 }
  0x55   :  { %s82_s26 = sshll.u32 %s3193_s25, 4  ;;  %p3157_p12 = scmp.ne.s32.totalorder %s3405_s6, %s3156_s30  ;;  %s83_s26 = int_to_ptr.vmem [resolvable:$true] %s82_s26 }
  0x56   :  { %p3160_p13 = scmp.lt.u32.totalorder %s3156_s30, %s3405_s6 }
  0x58   :  { %p3162_p0 = pnand %p3160_p13, %p3157_p12 }
  0x5a   :  { %3165 = shalt.err (!%p3162_p0)
}
  0x5b   :  { %s3166_s1 = scalar_lea.vmem %s83_s26, 64  ;;  %p3171_p2 = scmp.lt.s32.totalorder %s83_s26, %s83_s26 }
  0x5c   :  { %p3167_p1 = scmp.ne.s32.totalorder %s83_s26, %s3166_s1  ;;  %p3172_p3 = scmp.lt.s32.totalorder %s3166_s1, %s3166_s1 }
  0x5e   :  { %p3173_p4 = por %p3172_p3, %p3171_p2 }
  0x60   :  { %p3174_p5 = pnand %p3173_p4, %p3167_p1 }
  0x62   :  { %3177 = shalt.err (!%p3174_p5)
}
  0x63   :  { %85 = dma.hbm_to_vmem [thread:$0]  %s3405_s6, 64, %s83_s26, [#allocation11]  }
  0x64   :  { %3178 = dma.done.wait [#allocation3], 1024  }
  0x65   :  { %3179 = vsyncadd [#allocation3], 4294966272 }
  0x66   :  { %3180 = dma.done.wait [#allocation5], 16448  }
  0x67   :  { %3181 = vsyncadd [#allocation5], 4294950848 }
  0x68   :  { %3182 = dma.done.wait [#allocation8], 16448  }
  0x69   :  { %3183 = vsyncadd [#allocation8], 4294950848 }
  0x6a   :  { %3184 = dma.done.wait [#allocation11], 64  }
  0x6b   :  { %3185 = vsyncadd [#allocation11], 4294967232  ;;  %v3194_v0 = vmov 0   ;;  %v2644_v1 = vld [vmem:[#allocation2 + $0x4] ss:$16 sps:$4 sm:$0xff]   ;;  %vm181_vm0 = vcmask 261120  }
  0x6c   :  { %217 = vmatprep.mubr.bf16.mxu1 %v3194_v0  ;;  %2643 = vset.pattern.permute.xlu0 %v3194_v0  ;;  %v2646_v2 = vld [vmem:[#allocation2] ss:$16 sps:$4 sm:$0xff]   ;;  %v2647_v3 = vld [vmem:[#allocation2 + $0x24] ss:$16 sps:$4 sm:$0xff]   ;;  %v2652_v6 = vld [vmem:[#allocation2 + $0xc] ss:$16 sps:$4 sm:$0xff]  }
  0x6d   :  { %185 = vmatprep.subr.bf16.mxu1 %v2644_v1  ;;  %v2649_v4 = vld [vmem:[#allocation2 + $0x20] ss:$16 sps:$4 sm:$0xff]   ;;  %v2656_v8 = vld [vmem:[#allocation6 + $0x4] ss:$16 sps:$4 sm:$0xff]   ;;  %v2655_v10 = vld [vmem:[#allocation2 + $0x2c] ss:$16 sps:$4 sm:$0xff]  }
  0x6e   :  { %186 = vmatpush1.bf16.msra.mxu1 %v2646_v2  ;;  %v109_v5 = vld [vmem:[%s3399_s0] sm:$0xff]  ;;  %v2650_v9 = vld [vmem:[#allocation2 + $0x8] ss:$16 sps:$4 sm:$0xff]   ;;  %1065 = vmatprep.subr.bf16.mxu0 %v2656_v8  ;;  %v2658_v18 = vld [vmem:[#allocation6 + $0x8] ss:$16 sps:$4 sm:$0xff]   ;;  %vm2321_vm1 = vcmask 64512  }
  0x6f   :  { %187 = vmatprep.subr.bf16.mxu1 %v2647_v3  ;;  %v110_v7 = vpack.c.bf16 %v109_v5, %v109_v5  ;;  %v2661_v11 = vld [vmem:[#allocation6] ss:$16 sps:$4 sm:$0xff]   ;;  %v2662_v12 = vld [vmem:[#allocation6 + $0x24] ss:$16 sps:$4 sm:$0xff]   ;;  %v2660_v16 = vld [vmem:[#allocation6 + $0xc] ss:$16 sps:$4 sm:$0xff]  }
  0x70   :  { %v2653_v13 = vld [vmem:[#allocation2 + $0x28] ss:$16 sps:$4 sm:$0xff]   ;;  %1066 = vmatpush1.bf16.msra.mxu0 %v2661_v11  ;;  %v2667_v14 = vld [vmem:[#allocation6 + $0x20] ss:$16 sps:$4 sm:$0xff]   ;;  %v2666_v20 = vld [vmem:[#allocation6 + $0x2c] ss:$16 sps:$4 sm:$0xff]  }
  0x71   :  { %v2668_v15 = vld [vmem:[#allocation6 + $0x44] ss:$16 sps:$4 sm:$0xff]   ;;  %1067 = vmatprep.subr.bf16.mxu0 %v2662_v12  ;;  %v2673_v17 = vld [vmem:[#allocation6 + $0x40] ss:$16 sps:$4 sm:$0xff]   ;;  %v2664_v21 = vld [vmem:[#allocation6 + $0x28] ss:$16 sps:$4 sm:$0xff]  }
  0x72   :  { %188 = vmatpush1.bf16.msra.mxu1 %v2649_v4  ;;  %v2674_v19 = vld [vmem:[#allocation6 + $0x64] ss:$16 sps:$4 sm:$0xff]   ;;  %v2679_v22 = vld [vmem:[#allocation6 + $0x60] ss:$16 sps:$4 sm:$0xff]   ;;  %v2672_v24 = vld [vmem:[#allocation6 + $0x4c] ss:$16 sps:$4 sm:$0xff]  }
  0x73   :  { %226 = vmatprep.subr.bf16.mxu1 %v2652_v6  ;;  %v2680_v23 = vld [vmem:[#allocation6 + $0x84] ss:$16 sps:$4 sm:$0xff]   ;;  %v2685_v25 = vld [vmem:[#allocation6 + $0x80] ss:$16 sps:$4 sm:$0xff]   ;;  %v2670_v26 = vld [vmem:[#allocation6 + $0x48] ss:$16 sps:$4 sm:$0xff]  }
  0x74   :  { %1068 = vmatpush1.bf16.msra.mxu0 %v2667_v14  ;;  %v2686_v27 = vld [vmem:[#allocation6 + $0xa4] ss:$16 sps:$4 sm:$0xff]   ;;  %v2678_v28 = vld [vmem:[#allocation6 + $0x6c] ss:$16 sps:$4 sm:$0xff]   ;;  %v2676_v29 = vld [vmem:[#allocation6 + $0x68] ss:$16 sps:$4 sm:$0xff]  }
  0x75   :  { %2340 = vmatmul.mubr.msk.bf16.vlgmr.msra.gmra.mrb[0].mxu1 %vm181_vm0, %v110_v7  ;;  %1069 = vmatprep.subr.bf16.mxu0 %v2668_v15  ;;  %v2691_v30 = vld [vmem:[#allocation6 + $0xa0] ss:$16 sps:$4 sm:$0xff]   ;;  %v2692_v31 = vld [vmem:[#allocation6 + $0xc4] ss:$16 sps:$4 sm:$0xff]   ;;  %v2684_v32 = vld [vmem:[#allocation6 + $0x8c] ss:$16 sps:$4 sm:$0xff]  }
  0x76   :  { %227 = vmatpush1.bf16.msra.mxu1 %v2650_v9  ;;  %258 = vmatprep.mubr.bf16.mxu1 %v3194_v0  ;;  %v2697_v33 = vld [vmem:[#allocation6 + $0xc0] ss:$16 sps:$4 sm:$0xff]   ;;  %v2682_v34 = vld [vmem:[#allocation6 + $0x88] ss:$16 sps:$4 sm:$0xff]   ;;  %v2698_v35 = vld [vmem:[#allocation6 + $0xe4] ss:$16 sps:$4 sm:$0xff]  }
  0x77   :  { %228 = vmatprep.subr.bf16.mxu1 %v2655_v10  ;;  %v2690_v36 = vld [vmem:[#allocation6 + $0xac] ss:$16 sps:$4 sm:$0xff]   ;;  %v2688_v37 = vld [vmem:[#allocation6 + $0xa8] ss:$16 sps:$4 sm:$0xff]   ;;  %v2703_v38 = vld [vmem:[#allocation6 + $0xe0] ss:$16 sps:$4 sm:$0xff]  }
  0x78   :  { %1070 = vmatpush1.bf16.msra.mxu0 %v2673_v17  ;;  %v2704_v39 = vld [vmem:[#allocation6 + $0x104] ss:$16 sps:$4 sm:$0xff]   ;;  %v2696_v40 = vld [vmem:[#allocation6 + $0xcc] ss:$16 sps:$4 sm:$0xff]   ;;  %v2709_v41 = vld [vmem:[#allocation6 + $0x100] ss:$16 sps:$4 sm:$0xff]  }
  0x79   :  { %1071 = vmatprep.subr.bf16.mxu0 %v2674_v19  ;;  %v2694_v42 = vld [vmem:[#allocation6 + $0xc8] ss:$16 sps:$4 sm:$0xff]   ;;  %v2710_v43 = vld [vmem:[#allocation6 + $0x124] ss:$16 sps:$4 sm:$0xff]   ;;  %v2702_v44 = vld [vmem:[#allocation6 + $0xec] ss:$16 sps:$4 sm:$0xff]  }
  0x7a   :  { %229 = vmatpush1.bf16.msra.mxu1 %v2653_v13  ;;  %v2700_v45 = vld [vmem:[#allocation6 + $0xe8] ss:$16 sps:$4 sm:$0xff]   ;;  %v2708_v46 = vld [vmem:[#allocation6 + $0x10c] ss:$16 sps:$4 sm:$0xff]   ;;  %v2715_v47 = vld [vmem:[#allocation6 + $0x120] ss:$16 sps:$4 sm:$0xff]   ;;  %v121_v13 = vlaneseq }
  0x7b   :  { %1147 = vmatprep.subr.bf16.mxu1 %v2660_v16  ;;  %v2716_v48 = vld [vmem:[#allocation6 + $0x144] ss:$16 sps:$4 sm:$0xff]   ;;  %v2721_v49 = vld [vmem:[#allocation6 + $0x140] ss:$16 sps:$4 sm:$0xff]   ;;  %v2706_v50 = vld [vmem:[#allocation6 + $0x108] ss:$16 sps:$4 sm:$0xff]  }
  0x7c   :  { %1072 = vmatpush1.bf16.msra.mxu0 %v2679_v22  ;;  %v2722_v51 = vld [vmem:[#allocation6 + $0x164] ss:$16 sps:$4 sm:$0xff]   ;;  %v2714_v52 = vld [vmem:[#allocation6 + $0x12c] ss:$16 sps:$4 sm:$0xff]   ;;  %v2727_v53 = vld [vmem:[#allocation6 + $0x160] ss:$16 sps:$4 sm:$0xff]  }
  0x7d   :  { %2341 = vmatmul.mubr.msk.bf16.vlgmr.msra.gmra.mrb[4].mxu1 %vm181_vm0, %v110_v7  ;;  %1073 = vmatprep.subr.bf16.mxu0 %v2680_v23  ;;  %v2712_v54 = vld [vmem:[#allocation6 + $0x128] ss:$16 sps:$4 sm:$0xff]   ;;  %v2728_v55 = vld [vmem:[#allocation6 + $0x184] ss:$16 sps:$4 sm:$0xff]   ;;  %v2720_v56 = vld [vmem:[#allocation6 + $0x14c] ss:$16 sps:$4 sm:$0xff]  }
  0x7e   :  { %1148 = vmatpush1.bf16.msra.mxu1 %v2658_v18  ;;  %v2733_v57 = vld [vmem:[#allocation6 + $0x180] ss:$16 sps:$4 sm:$0xff]   ;;  %v2718_v58 = vld [vmem:[#allocation6 + $0x148] ss:$16 sps:$4 sm:$0xff]   ;;  %v2734_v59 = vld [vmem:[#allocation6 + $0x1a4] ss:$16 sps:$4 sm:$0xff]  }
  0x7f   :  { %1149 = vmatprep.subr.bf16.mxu1 %v2666_v20  ;;  %v2726_v60 = vld [vmem:[#allocation6 + $0x16c] ss:$16 sps:$4 sm:$0xff]   ;;  %v2739_v61 = vld [vmem:[#allocation6 + $0x1a0] ss:$16 sps:$4 sm:$0xff]   ;;  %v2724_v62 = vld [vmem:[#allocation6 + $0x168] ss:$16 sps:$4 sm:$0xff]  }
  0x80   :  { %1074 = vmatpush1.bf16.msra.mxu0 %v2685_v25  ;;  %v2732_v63 = vld [vmem:[#allocation6 + $0x18c] ss:$16 sps:$4 sm:$0xff]   ;;  %v2730_v0 = vld [vmem:[#allocation6 + $0x188] ss:$16 sps:$4 sm:$0xff]   ;;  %v2740_v3 = vld [vmem:[#allocation6 + $0x1c4] ss:$16 sps:$4 sm:$0xff]  }
  0x81   :  { %1075 = vmatprep.subr.bf16.mxu0 %v2686_v27  ;;  %v2738_v1 = vld [vmem:[#allocation6 + $0x1ac] ss:$16 sps:$4 sm:$0xff]   ;;  %v2736_v2 = vld [vmem:[#allocation6 + $0x1a8] ss:$16 sps:$4 sm:$0xff]   ;;  %v2745_v6 = vld [vmem:[#allocation6 + $0x1c0] ss:$16 sps:$4 sm:$0xff]  }
  0x82   :  { %1150 = vmatpush1.bf16.msra.mxu1 %v2664_v21  ;;  %v2744_v4 = vld [vmem:[#allocation6 + $0x1cc] ss:$16 sps:$4 sm:$0xff]   ;;  %v2742_v5 = vld [vmem:[#allocation6 + $0x1c8] ss:$16 sps:$4 sm:$0xff]   ;;  %v2746_v7 = vld [vmem:[#allocation6 + $0x1e4] ss:$16 sps:$4 sm:$0xff]  }
  0x83   :  { %1151 = vmatprep.subr.bf16.mxu1 %v2672_v24  ;;  %v2750_v8 = vld [vmem:[#allocation6 + $0x1ec] ss:$16 sps:$4 sm:$0xff]   ;;  %v2748_v9 = vld [vmem:[#allocation6 + $0x1e8] ss:$16 sps:$4 sm:$0xff]   ;;  %v2751_v10 = vld [vmem:[#allocation6 + $0x1e0] ss:$16 sps:$4 sm:$0xff]  }
  0x84   :  { %1076 = vmatpush1.bf16.msra.mxu0 %v2691_v30  ;;  %v2754_v11 = vld [vmem:[#allocation6 + $0x204] ss:$16 sps:$4 sm:$0xff]   ;;  %v2757_v12 = vld [vmem:[#allocation6 + $0x20c] ss:$16 sps:$4 sm:$0xff]   ;;  %v3331_v14 = vshrl.u32 %v121_v13, 7 }
  0x85   :  { %1077 = vmatprep.subr.bf16.mxu0 %v2692_v31  ;;  %v3336_v16 = vld [vmem:[#allocation4] sm:$0xf]  ;;  %v2752_v30 = vld [vmem:[#allocation6 + $0x200] ss:$16 sps:$4 sm:$0xff]   ;;  %v2755_v31 = vld [vmem:[#allocation6 + $0x208] ss:$16 sps:$4 sm:$0xff]  }
  0x86   :  { %1152 = vmatpush1.bf16.msra.mxu1 %v2670_v26  ;;  %v3334_v15 = vsub.s32 0, %v3331_v14  ;;  %v3339_v17 = vsub.s32 1, %v3331_v14  ;;  %v3346_v25 = vsub.s32 3, %v3331_v14  ;;  %v2814_v13 = vld [vmem:[#allocation6 + $0x344] ss:$16 sps:$4 sm:$0xff]  }
  0x87   :  { %1153 = vmatprep.subr.bf16.mxu1 %v2678_v28 }
  0x88   :  { %1078 = vmatpush1.bf16.msra.mxu0 %v2697_v33  ;;  %v124_v18 = vrot.slane %v3336_v16, %v3334_v15  ;;  %v128_v19 = vrot.slane %v3336_v16, %v3339_v17 }
  0x89   :  { %1079 = vmatprep.subr.bf16.mxu0 %v2698_v35  ;;  %v2763_v35 = vld [vmem:[#allocation6 + $0x22c] ss:$16 sps:$4 sm:$0xff]  }
  0x8a   :  { %1154 = vmatpush1.bf16.msra.mxu1 %v2676_v29 }
  0x8b   :  { %1155 = vmatprep.subr.bf16.mxu1 %v2684_v32  ;;  %v136_v32 = vrot.slane %v3336_v16, %v3346_v25 }
  0x8c   :  { %1080 = vmatpush1.bf16.msra.mxu0 %v2703_v38  ;;  %v2758_v38 = vld [vmem:[#allocation6 + $0x220] ss:$16 sps:$4 sm:$0xff]  }
  0x8d   :  { %1081 = vmatprep.subr.bf16.mxu0 %v2704_v39  ;;  %v2761_v39 = vld [vmem:[#allocation6 + $0x228] ss:$16 sps:$4 sm:$0xff]  }
  0x8e   :  { %1156 = vmatpush1.bf16.msra.mxu1 %v2682_v34  ;;  %v2760_v34 = vld [vmem:[#allocation6 + $0x224] ss:$16 sps:$4 sm:$0xff]  }
  0x8f   :  { %1157 = vmatprep.subr.bf16.mxu1 %v2690_v36 }
  0x90   :  { %1082 = vmatpush1.bf16.msra.mxu0 %v2709_v41 }
  0x91   :  { %1083 = vmatprep.subr.bf16.mxu0 %v2710_v43  ;;  %v2769_v43 = vld [vmem:[#allocation6 + $0x24c] ss:$16 sps:$4 sm:$0xff]  }
  0x92   :  { %1158 = vmatpush1.bf16.msra.mxu1 %v2688_v37 }
  0x93   :  { %1159 = vmatprep.subr.bf16.mxu1 %v2696_v40 }
  0x94   :  { %1084 = vmatpush1.bf16.msra.mxu0 %v2715_v47  ;;  %v2767_v47 = vld [vmem:[#allocation6 + $0x248] ss:$16 sps:$4 sm:$0xff]  }
  0x95   :  { %1085 = vmatprep.subr.bf16.mxu0 %v2716_v48 }
  0x96   :  { %1160 = vmatpush1.bf16.msra.mxu1 %v2694_v42  ;;  %v2766_v42 = vld [vmem:[#allocation6 + $0x244] ss:$16 sps:$4 sm:$0xff]  }
  0x97   :  { %1161 = vmatprep.subr.bf16.mxu1 %v2702_v44 }
  0x98   :  { %1086 = vmatpush1.bf16.msra.mxu0 %v2721_v49  ;;  %v2772_v49 = vld [vmem:[#allocation6 + $0x264] ss:$16 sps:$4 sm:$0xff]  }
  0x99   :  { %1087 = vmatprep.subr.bf16.mxu0 %v2722_v51  ;;  %v2770_v51 = vld [vmem:[#allocation6 + $0x260] ss:$16 sps:$4 sm:$0xff]  }
  0x9a   :  { %1162 = vmatpush1.bf16.msra.mxu1 %v2700_v45 }
  0x9b   :  { %1163 = vmatprep.subr.bf16.mxu1 %v2708_v46  ;;  %v2764_v46 = vld [vmem:[#allocation6 + $0x240] ss:$16 sps:$4 sm:$0xff]  }
  0x9c   :  { %1088 = vmatpush1.bf16.msra.mxu0 %v2727_v53  ;;  %v2778_v53 = vld [vmem:[#allocation6 + $0x284] ss:$16 sps:$4 sm:$0xff]  }
  0x9d   :  { %1089 = vmatprep.subr.bf16.mxu0 %v2728_v55  ;;  %v2776_v55 = vld [vmem:[#allocation6 + $0x280] ss:$16 sps:$4 sm:$0xff]  }
  0x9e   :  { %1164 = vmatpush1.bf16.msra.mxu1 %v2706_v50  ;;  %v2775_v50 = vld [vmem:[#allocation6 + $0x26c] ss:$16 sps:$4 sm:$0xff]  }
  0x9f   :  { %1165 = vmatprep.subr.bf16.mxu1 %v2714_v52  ;;  %v2773_v52 = vld [vmem:[#allocation6 + $0x268] ss:$16 sps:$4 sm:$0xff]  }
  0xa0   :  { %1090 = vmatpush1.bf16.msra.mxu0 %v2733_v57  ;;  %v2784_v57 = vld [vmem:[#allocation6 + $0x2a4] ss:$16 sps:$4 sm:$0xff]  }
  0xa1   :  { %1091 = vmatprep.subr.bf16.mxu0 %v2734_v59  ;;  %v2782_v59 = vld [vmem:[#allocation6 + $0x2a0] ss:$16 sps:$4 sm:$0xff]  }
  0xa2   :  { %1166 = vmatpush1.bf16.msra.mxu1 %v2712_v54  ;;  %v2781_v54 = vld [vmem:[#allocation6 + $0x28c] ss:$16 sps:$4 sm:$0xff]  }
  0xa3   :  { %1167 = vmatprep.subr.bf16.mxu1 %v2720_v56  ;;  %v2779_v56 = vld [vmem:[#allocation6 + $0x288] ss:$16 sps:$4 sm:$0xff]  }
  0xa4   :  { %1092 = vmatpush1.bf16.msra.mxu0 %v2739_v61  ;;  %v2790_v61 = vld [vmem:[#allocation6 + $0x2c4] ss:$16 sps:$4 sm:$0xff]  }
  0xa5   :  { %1093 = vmatprep.subr.bf16.mxu0 %v2740_v3  ;;  %v2794_v3 = vld [vmem:[#allocation6 + $0x2e0] ss:$16 sps:$4 sm:$0xff]  }
  0xa6   :  { %1168 = vmatpush1.bf16.msra.mxu1 %v2718_v58  ;;  %v2787_v58 = vld [vmem:[#allocation6 + $0x2ac] ss:$16 sps:$4 sm:$0xff]  }
  0xa7   :  { %1169 = vmatprep.subr.bf16.mxu1 %v2726_v60  ;;  %v2785_v60 = vld [vmem:[#allocation6 + $0x2a8] ss:$16 sps:$4 sm:$0xff]  }
  0xa8   :  { %1094 = vmatpush1.bf16.msra.mxu0 %v2745_v6  ;;  %v2805_v6 = vld [vmem:[#allocation6 + $0x30c] ss:$16 sps:$4 sm:$0xff]  }
  0xa9   :  { %1095 = vmatprep.subr.bf16.mxu0 %v2746_v7  ;;  %v2800_v7 = vld [vmem:[#allocation6 + $0x300] ss:$16 sps:$4 sm:$0xff]  }
  0xaa   :  { %1170 = vmatpush1.bf16.msra.mxu1 %v2724_v62  ;;  %v2793_v62 = vld [vmem:[#allocation6 + $0x2cc] ss:$16 sps:$4 sm:$0xff]  }
  0xab   :  { %1171 = vmatprep.subr.bf16.mxu1 %v2732_v63  ;;  %v2788_v63 = vld [vmem:[#allocation6 + $0x2c0] ss:$16 sps:$4 sm:$0xff]  }
  0xac   :  { %1096 = vmatpush1.bf16.msra.mxu0 %v2751_v10  ;;  %v2811_v10 = vld [vmem:[#allocation6 + $0x32c] ss:$16 sps:$4 sm:$0xff]  }
  0xad   :  { %1106 = vmatprep.subr.bf16.mxu0 %v2754_v11  ;;  %v2806_v11 = vld [vmem:[#allocation6 + $0x320] ss:$16 sps:$4 sm:$0xff]  }
  0xae   :  { %1172 = vmatpush1.bf16.msra.mxu1 %v2730_v0  ;;  %v2791_v0 = vld [vmem:[#allocation6 + $0x2c8] ss:$16 sps:$4 sm:$0xff]  }
  0xaf   :  { %1173 = vmatprep.subr.bf16.mxu1 %v2738_v1  ;;  %v2796_v1 = vld [vmem:[#allocation6 + $0x2e4] ss:$16 sps:$4 sm:$0xff]  }
  0xb2   :  { %1174 = vmatpush1.bf16.msra.mxu1 %v2736_v2  ;;  %v2799_v2 = vld [vmem:[#allocation6 + $0x2ec] ss:$16 sps:$4 sm:$0xff]  }
  0xb3   :  { %1175 = vmatprep.subr.bf16.mxu1 %v2744_v4  ;;  %v2797_v4 = vld [vmem:[#allocation6 + $0x2e8] ss:$16 sps:$4 sm:$0xff]  }
  0xb6   :  { %1176 = vmatpush1.bf16.msra.mxu1 %v2742_v5  ;;  %v2802_v5 = vld [vmem:[#allocation6 + $0x304] ss:$16 sps:$4 sm:$0xff]  }
  0xb7   :  { %1177 = vmatprep.subr.bf16.mxu1 %v2750_v8  ;;  %v2803_v8 = vld [vmem:[#allocation6 + $0x308] ss:$16 sps:$4 sm:$0xff]  }
  0xba   :  { %1178 = vmatpush1.bf16.msra.mxu1 %v2748_v9  ;;  %v2808_v9 = vld [vmem:[#allocation6 + $0x324] ss:$16 sps:$4 sm:$0xff]  }
  0xbb   :  { %1188 = vmatprep.subr.bf16.mxu1 %v2757_v12  ;;  %v2809_v12 = vld [vmem:[#allocation6 + $0x328] ss:$16 sps:$4 sm:$0xff]  }
 0x148   :  { %v219_v20 = vpop.f32.mrb[0].mxu1 }
 0x149   :  { %v220_v21 = vadd.f32 %v219_v20, %v124_v18  ;;  %v221_v22 = vpop.f32.mrb[1].mxu1  ;;  %v2817_v18 = vld [vmem:[#allocation6 + $0x34c] ss:$16 sps:$4 sm:$0xff]   ;;  %v2815_v20 = vld [vmem:[#allocation6 + $0x348] ss:$16 sps:$4 sm:$0xff]  }
 0x14a   :  { %v222_v23 = vadd.f32 %v221_v22, %v128_v19  ;;  %v223_v24 = vpop.f32.mrb[2].mxu1  ;;  %v2812_v19 = vld [vmem:[#allocation6 + $0x340] ss:$16 sps:$4 sm:$0xff]   ;;  %v2823_v22 = vld [vmem:[#allocation6 + $0x36c] ss:$16 sps:$4 sm:$0xff]  }
 0x14b   :  { %v267_v26 = vmax.f32 %v220_v21, 0.0  ;;  %v224_v27 = vpop.f32.mrb[3].mxu1  ;;  %v2820_v21 = vld [vmem:[#allocation6 + $0x364] ss:$16 sps:$4 sm:$0xff]   ;;  %v2821_v24 = vld [vmem:[#allocation6 + $0x368] ss:$16 sps:$4 sm:$0xff]  }
 0x14c   :  { %v268_v28 = vmax.f32 %v222_v23, 0.0  ;;  %v2818_v23 = vld [vmem:[#allocation6 + $0x360] ss:$16 sps:$4 sm:$0xff]   ;;  %v2829_v27 = vld [vmem:[#allocation6 + $0x38c] ss:$16 sps:$4 sm:$0xff]  }
 0x14d   :  { %v271_v33 = vpack.c.bf16 %v267_v26, %v267_v26  ;;  %v2826_v26 = vld [vmem:[#allocation6 + $0x384] ss:$16 sps:$4 sm:$0xff]  }
 0x14e   :  { %v272_v29 = vpack.c.bf16 %v268_v28, %v268_v28  ;;  %v2824_v28 = vld [vmem:[#allocation6 + $0x380] ss:$16 sps:$4 sm:$0xff]  }
 0x150   :  { %1097 = vmatprep.mubr.bf16.mxu0 %v272_v29  ;;  %1179 = vmatprep.mubr.bf16.mxu1 %v272_v29  ;;  %v3350_v36 = vpop.f32.mrb[4].mxu1  ;;  %v2827_v29 = vld [vmem:[#allocation6 + $0x388] ss:$16 sps:$4 sm:$0xff]  }
 0x151   :  { %1098 = vmatmul.mubr.bf16.vlgmr.msra.gmra.mrb[0].mxu0 %v271_v33  ;;  %1180 = vmatmul.mubr.bf16.vlgmr.msra.gmra.mrb[8].mxu1 %v271_v33  ;;  %v262_v37 = vpop.f32.mrb[5].mxu1  ;;  %v2830_v33 = vld [vmem:[#allocation6 + $0x3a0] ss:$16 sps:$4 sm:$0xff]  }
 0x152   :  { %1107 = vmatpush1.bf16.msra.mxu0 %v2752_v30  ;;  %1189 = vmatpush1.bf16.msra.mxu1 %v2755_v31  ;;  %v263_v40 = vadd.f32 %v262_v37, %v136_v32  ;;  %v264_v41 = vpop.f32.mrb[6].mxu1  ;;  %v3353_v30 = vsub.s32 2, %v3331_v14  ;;  %v2832_v31 = vld [vmem:[#allocation6 + $0x3a4] ss:$16 sps:$4 sm:$0xff]   ;;  %v2835_v32 = vld [vmem:[#allocation6 + $0x3ac] ss:$16 sps:$4 sm:$0xff]  }
 0x153   :  { %1108 = vmatprep.subr.bf16.mxu0 %v2760_v34  ;;  %1190 = vmatprep.subr.bf16.mxu1 %v2763_v35  ;;  %v265_v44 = vpop.f32.mrb[7].mxu1  ;;  %v2833_v34 = vld [vmem:[#allocation6 + $0x3a8] ss:$16 sps:$4 sm:$0xff]   ;;  %v2838_v37 = vld [vmem:[#allocation6 + $0x3c4] ss:$16 sps:$4 sm:$0xff]  }
 0x154   :  { %v270_v45 = vmax.f32 %v263_v40, 0.0  ;;  %v132_v35 = vrot.slane %v3336_v16, %v3353_v30  ;;  %v2839_v40 = vld [vmem:[#allocation6 + $0x3c8] ss:$16 sps:$4 sm:$0xff]   ;;  %v2844_v41 = vld [vmem:[#allocation6 + $0x3e4] ss:$16 sps:$4 sm:$0xff]  }
 0x155   :  { %v2845_v44 = vld [vmem:[#allocation6 + $0x3e8] ss:$16 sps:$4 sm:$0xff]  }
 0x156   :  { %1109 = vmatpush1.bf16.msra.mxu0 %v2758_v38  ;;  %1191 = vmatpush1.bf16.msra.mxu1 %v2761_v39  ;;  %v274_v48 = vpack.c.bf16 %v270_v45, %v270_v45  ;;  %v2841_v38 = vld [vmem:[#allocation6 + $0x3cc] ss:$16 sps:$4 sm:$0xff]   ;;  %v2836_v39 = vld [vmem:[#allocation6 + $0x3c0] ss:$16 sps:$4 sm:$0xff]   ;;  %v261_v14 = vadd.f32 %v3350_v36, %v132_v35  ;;  %v2850_v16 = vld [vmem:[#allocation9 + $0x4] ss:$16 sps:$4 sm:$0xff]  }
 0x157   :  { %1110 = vmatprep.subr.bf16.mxu0 %v2766_v42  ;;  %1192 = vmatprep.subr.bf16.mxu1 %v2769_v43  ;;  %v2847_v42 = vld [vmem:[#allocation6 + $0x3ec] ss:$16 sps:$4 sm:$0xff]   ;;  %v2842_v43 = vld [vmem:[#allocation6 + $0x3e0] ss:$16 sps:$4 sm:$0xff]   ;;  %v2856_v36 = vld [vmem:[#allocation9 + $0x24] ss:$16 sps:$4 sm:$0xff]  }
 0x158   :  { %1138 = vmatprep.mubr.bf16.mxu0 %v274_v48  ;;  %1220 = vmatprep.mubr.bf16.mxu1 %v274_v48  ;;  %v269_v45 = vmax.f32 %v261_v14, 0.0  ;;  %v2851_v48 = vld [vmem:[#allocation9 + $0x8] ss:$16 sps:$4 sm:$0xff]   ;;  %v2922_v35 = vld [vmem:[#allocation9 + $0x184] ss:$16 sps:$4 sm:$0xff]  }
 0x159   :  { %v2931_v14 = vld [vmem:[#allocation9 + $0x1ac] ss:$16 sps:$4 sm:$0xff]  }
 0x15a   :  { %1111 = vmatpush1.bf16.msra.mxu0 %v2764_v46  ;;  %1193 = vmatpush1.bf16.msra.mxu1 %v2767_v47  ;;  %v2853_v46 = vld [vmem:[#allocation9 + $0xc] ss:$16 sps:$4 sm:$0xff]   ;;  %v2848_v47 = vld [vmem:[#allocation9] ss:$16 sps:$4 sm:$0xff]  }
 0x15b   :  { %1112 = vmatprep.subr.bf16.mxu0 %v2772_v49  ;;  %1194 = vmatprep.subr.bf16.mxu1 %v2775_v50  ;;  %v273_v49 = vpack.c.bf16 %v269_v45, %v269_v45  ;;  %v2859_v50 = vld [vmem:[#allocation9 + $0x2c] ss:$16 sps:$4 sm:$0xff]   ;;  %v2932_v45 = vld [vmem:[#allocation9 + $0x1c0] ss:$16 sps:$4 sm:$0xff]  }
 0x15e   :  { %1113 = vmatpush1.bf16.msra.mxu0 %v2770_v51  ;;  %1195 = vmatpush1.bf16.msra.mxu1 %v2773_v52  ;;  %v2854_v51 = vld [vmem:[#allocation9 + $0x20] ss:$16 sps:$4 sm:$0xff]   ;;  %v2857_v52 = vld [vmem:[#allocation9 + $0x28] ss:$16 sps:$4 sm:$0xff]  }
 0x15f   :  { %1114 = vmatprep.subr.bf16.mxu0 %v2778_v53  ;;  %1196 = vmatprep.subr.bf16.mxu1 %v2781_v54  ;;  %v2862_v53 = vld [vmem:[#allocation9 + $0x44] ss:$16 sps:$4 sm:$0xff]   ;;  %v2865_v54 = vld [vmem:[#allocation9 + $0x4c] ss:$16 sps:$4 sm:$0xff]  }
 0x162   :  { %1115 = vmatpush1.bf16.msra.mxu0 %v2776_v55  ;;  %1197 = vmatpush1.bf16.msra.mxu1 %v2779_v56  ;;  %v2860_v55 = vld [vmem:[#allocation9 + $0x40] ss:$16 sps:$4 sm:$0xff]   ;;  %v2863_v56 = vld [vmem:[#allocation9 + $0x48] ss:$16 sps:$4 sm:$0xff]  }
 0x163   :  { %1116 = vmatprep.subr.bf16.mxu0 %v2784_v57  ;;  %1198 = vmatprep.subr.bf16.mxu1 %v2787_v58  ;;  %v2868_v57 = vld [vmem:[#allocation9 + $0x64] ss:$16 sps:$4 sm:$0xff]   ;;  %v2871_v58 = vld [vmem:[#allocation9 + $0x6c] ss:$16 sps:$4 sm:$0xff]  }
 0x166   :  { %1117 = vmatpush1.bf16.msra.mxu0 %v2782_v59  ;;  %1199 = vmatpush1.bf16.msra.mxu1 %v2785_v60  ;;  %v2866_v59 = vld [vmem:[#allocation9 + $0x60] ss:$16 sps:$4 sm:$0xff]   ;;  %v2869_v60 = vld [vmem:[#allocation9 + $0x68] ss:$16 sps:$4 sm:$0xff]  }
 0x167   :  { %1118 = vmatprep.subr.bf16.mxu0 %v2790_v61  ;;  %1200 = vmatprep.subr.bf16.mxu1 %v2793_v62  ;;  %v2874_v61 = vld [vmem:[#allocation9 + $0x84] ss:$16 sps:$4 sm:$0xff]   ;;  %v2877_v62 = vld [vmem:[#allocation9 + $0x8c] ss:$16 sps:$4 sm:$0xff]  }
 0x16a   :  { %1119 = vmatpush1.bf16.msra.mxu0 %v2788_v63  ;;  %1201 = vmatpush1.bf16.msra.mxu1 %v2791_v0  ;;  %v2872_v63 = vld [vmem:[#allocation9 + $0x80] ss:$16 sps:$4 sm:$0xff]   ;;  %v2875_v0 = vld [vmem:[#allocation9 + $0x88] ss:$16 sps:$4 sm:$0xff]  }
 0x16b   :  { %1120 = vmatprep.subr.bf16.mxu0 %v2796_v1  ;;  %1202 = vmatprep.subr.bf16.mxu1 %v2799_v2  ;;  %v2880_v1 = vld [vmem:[#allocation9 + $0xa4] ss:$16 sps:$4 sm:$0xff]   ;;  %v2883_v2 = vld [vmem:[#allocation9 + $0xac] ss:$16 sps:$4 sm:$0xff]  }
 0x16e   :  { %1121 = vmatpush1.bf16.msra.mxu0 %v2794_v3  ;;  %1203 = vmatpush1.bf16.msra.mxu1 %v2797_v4  ;;  %v2878_v3 = vld [vmem:[#allocation9 + $0xa0] ss:$16 sps:$4 sm:$0xff]   ;;  %v2881_v4 = vld [vmem:[#allocation9 + $0xa8] ss:$16 sps:$4 sm:$0xff]  }
 0x16f   :  { %1122 = vmatprep.subr.bf16.mxu0 %v2802_v5  ;;  %1204 = vmatprep.subr.bf16.mxu1 %v2805_v6  ;;  %v2886_v5 = vld [vmem:[#allocation9 + $0xc4] ss:$16 sps:$4 sm:$0xff]   ;;  %v2889_v6 = vld [vmem:[#allocation9 + $0xcc] ss:$16 sps:$4 sm:$0xff]  }
 0x172   :  { %1123 = vmatpush1.bf16.msra.mxu0 %v2800_v7  ;;  %1205 = vmatpush1.bf16.msra.mxu1 %v2803_v8  ;;  %v2884_v7 = vld [vmem:[#allocation9 + $0xc0] ss:$16 sps:$4 sm:$0xff]   ;;  %v2887_v8 = vld [vmem:[#allocation9 + $0xc8] ss:$16 sps:$4 sm:$0xff]  }
 0x173   :  { %1124 = vmatprep.subr.bf16.mxu0 %v2808_v9  ;;  %1206 = vmatprep.subr.bf16.mxu1 %v2811_v10  ;;  %v2892_v9 = vld [vmem:[#allocation9 + $0xe4] ss:$16 sps:$4 sm:$0xff]   ;;  %v2895_v10 = vld [vmem:[#allocation9 + $0xec] ss:$16 sps:$4 sm:$0xff]  }
 0x176   :  { %1125 = vmatpush1.bf16.msra.mxu0 %v2806_v11  ;;  %1207 = vmatpush1.bf16.msra.mxu1 %v2809_v12  ;;  %v2890_v11 = vld [vmem:[#allocation9 + $0xe0] ss:$16 sps:$4 sm:$0xff]   ;;  %v2893_v12 = vld [vmem:[#allocation9 + $0xe8] ss:$16 sps:$4 sm:$0xff]  }
 0x177   :  { %1126 = vmatprep.subr.bf16.mxu0 %v2814_v13  ;;  %1208 = vmatprep.subr.bf16.mxu1 %v2817_v18  ;;  %v2898_v13 = vld [vmem:[#allocation9 + $0x104] ss:$16 sps:$4 sm:$0xff]   ;;  %v2901_v18 = vld [vmem:[#allocation9 + $0x10c] ss:$16 sps:$4 sm:$0xff]  }
 0x17a   :  { %1127 = vmatpush1.bf16.msra.mxu0 %v2812_v19  ;;  %1209 = vmatpush1.bf16.msra.mxu1 %v2815_v20  ;;  %v2896_v19 = vld [vmem:[#allocation9 + $0x100] ss:$16 sps:$4 sm:$0xff]   ;;  %v2899_v20 = vld [vmem:[#allocation9 + $0x108] ss:$16 sps:$4 sm:$0xff]  }
 0x17b   :  { %1128 = vmatprep.subr.bf16.mxu0 %v2820_v21  ;;  %1210 = vmatprep.subr.bf16.mxu1 %v2823_v22  ;;  %v2904_v21 = vld [vmem:[#allocation9 + $0x124] ss:$16 sps:$4 sm:$0xff]   ;;  %v2907_v22 = vld [vmem:[#allocation9 + $0x12c] ss:$16 sps:$4 sm:$0xff]  }
 0x17e   :  { %1129 = vmatpush1.bf16.msra.mxu0 %v2818_v23  ;;  %1211 = vmatpush1.bf16.msra.mxu1 %v2821_v24  ;;  %v2902_v23 = vld [vmem:[#allocation9 + $0x120] ss:$16 sps:$4 sm:$0xff]   ;;  %v2905_v24 = vld [vmem:[#allocation9 + $0x128] ss:$16 sps:$4 sm:$0xff]  }
 0x17f   :  { %1130 = vmatprep.subr.bf16.mxu0 %v2826_v26  ;;  %1212 = vmatprep.subr.bf16.mxu1 %v2829_v27  ;;  %v2910_v26 = vld [vmem:[#allocation9 + $0x144] ss:$16 sps:$4 sm:$0xff]   ;;  %v2913_v27 = vld [vmem:[#allocation9 + $0x14c] ss:$16 sps:$4 sm:$0xff]  }
 0x182   :  { %1131 = vmatpush1.bf16.msra.mxu0 %v2824_v28  ;;  %1213 = vmatpush1.bf16.msra.mxu1 %v2827_v29  ;;  %v2908_v28 = vld [vmem:[#allocation9 + $0x140] ss:$16 sps:$4 sm:$0xff]   ;;  %v2911_v29 = vld [vmem:[#allocation9 + $0x148] ss:$16 sps:$4 sm:$0xff]  }
 0x183   :  { %1132 = vmatprep.subr.bf16.mxu0 %v2832_v31  ;;  %1214 = vmatprep.subr.bf16.mxu1 %v2835_v32  ;;  %v2916_v31 = vld [vmem:[#allocation9 + $0x164] ss:$16 sps:$4 sm:$0xff]   ;;  %v2919_v32 = vld [vmem:[#allocation9 + $0x16c] ss:$16 sps:$4 sm:$0xff]  }
 0x186   :  { %1133 = vmatpush1.bf16.msra.mxu0 %v2830_v33  ;;  %1215 = vmatpush1.bf16.msra.mxu1 %v2833_v34  ;;  %v2914_v33 = vld [vmem:[#allocation9 + $0x160] ss:$16 sps:$4 sm:$0xff]   ;;  %v2917_v34 = vld [vmem:[#allocation9 + $0x168] ss:$16 sps:$4 sm:$0xff]  }
 0x187   :  { %1134 = vmatprep.subr.bf16.mxu0 %v2838_v37  ;;  %1216 = vmatprep.subr.bf16.mxu1 %v2841_v38  ;;  %v2925_v37 = vld [vmem:[#allocation9 + $0x18c] ss:$16 sps:$4 sm:$0xff]   ;;  %v2920_v38 = vld [vmem:[#allocation9 + $0x180] ss:$16 sps:$4 sm:$0xff]  }
 0x18a   :  { %1135 = vmatpush1.bf16.msra.mxu0 %v2836_v39  ;;  %1217 = vmatpush1.bf16.msra.mxu1 %v2839_v40  ;;  %v2923_v39 = vld [vmem:[#allocation9 + $0x188] ss:$16 sps:$4 sm:$0xff]   ;;  %v2928_v40 = vld [vmem:[#allocation9 + $0x1a4] ss:$16 sps:$4 sm:$0xff]  }
 0x18b   :  { %1136 = vmatprep.subr.bf16.mxu0 %v2844_v41  ;;  %1218 = vmatprep.subr.bf16.mxu1 %v2847_v42  ;;  %v2926_v41 = vld [vmem:[#allocation9 + $0x1a0] ss:$16 sps:$4 sm:$0xff]   ;;  %v2929_v42 = vld [vmem:[#allocation9 + $0x1a8] ss:$16 sps:$4 sm:$0xff]  }
 0x18e   :  { %1137 = vmatpush1.bf16.msra.mxu0 %v2842_v43  ;;  %1219 = vmatpush1.bf16.msra.mxu1 %v2845_v44  ;;  %v2934_v43 = vld [vmem:[#allocation9 + $0x1c4] ss:$16 sps:$4 sm:$0xff]   ;;  %v2937_v44 = vld [vmem:[#allocation9 + $0x1cc] ss:$16 sps:$4 sm:$0xff]  }
 0x18f   :  { %2027 = vmatprep.subr.bf16.mxu0 %v2850_v16  ;;  %2109 = vmatprep.subr.bf16.mxu1 %v2853_v46  ;;  %v2935_v16 = vld [vmem:[#allocation9 + $0x1c8] ss:$16 sps:$4 sm:$0xff]   ;;  %v2940_v46 = vld [vmem:[#allocation9 + $0x1e4] ss:$16 sps:$4 sm:$0xff]  }
 0x191   :  { %1139 = vmatmul.mubr.bf16.vlgmr.msra.gmra.mrb[0].mxu0 %v273_v49  ;;  %1221 = vmatmul.mubr.bf16.vlgmr.msra.gmra.mrb[8].mxu1 %v273_v49  ;;  %v2941_v49 = vld [vmem:[#allocation9 + $0x1e8] ss:$16 sps:$4 sm:$0xff]  }
 0x192   :  { %2028 = vmatpush1.bf16.msra.mxu0 %v2848_v47  ;;  %2110 = vmatpush1.bf16.msra.mxu1 %v2851_v48  ;;  %v2943_v47 = vld [vmem:[#allocation9 + $0x1ec] ss:$16 sps:$4 sm:$0xff]   ;;  %v2938_v48 = vld [vmem:[#allocation9 + $0x1e0] ss:$16 sps:$4 sm:$0xff]  }
 0x193   :  { %2029 = vmatprep.subr.bf16.mxu0 %v2856_v36  ;;  %2111 = vmatprep.subr.bf16.mxu1 %v2859_v50  ;;  %v2946_v36 = vld [vmem:[#allocation9 + $0x204] ss:$16 sps:$4 sm:$0xff]   ;;  %v2949_v50 = vld [vmem:[#allocation9 + $0x20c] ss:$16 sps:$4 sm:$0xff]  }
 0x196   :  { %2030 = vmatpush1.bf16.msra.mxu0 %v2854_v51  ;;  %2112 = vmatpush1.bf16.msra.mxu1 %v2857_v52  ;;  %v3358_v51 = vld [vmem:[#allocation7] sm:$0xf] }
 0x197   :  { %2031 = vmatprep.subr.bf16.mxu0 %v2862_v53  ;;  %2113 = vmatprep.subr.bf16.mxu1 %v2865_v54  ;;  %v408_v52 = vrot.slane %v3358_v51, %v3334_v15  ;;  %v412_v53 = vrot.slane %v3358_v51, %v3339_v17  ;;  %v420_v54 = vrot.slane %v3358_v51, %v3346_v25 }
 0x19a   :  { %2032 = vmatpush1.bf16.msra.mxu0 %v2860_v55  ;;  %2114 = vmatpush1.bf16.msra.mxu1 %v2863_v56 }
 0x19b   :  { %2033 = vmatprep.subr.bf16.mxu0 %v2868_v57  ;;  %2115 = vmatprep.subr.bf16.mxu1 %v2871_v58 }
 0x19e   :  { %2034 = vmatpush1.bf16.msra.mxu0 %v2866_v59  ;;  %2116 = vmatpush1.bf16.msra.mxu1 %v2869_v60 }
 0x19f   :  { %2035 = vmatprep.subr.bf16.mxu0 %v2874_v61  ;;  %2117 = vmatprep.subr.bf16.mxu1 %v2877_v62 }
 0x1a2   :  { %2036 = vmatpush1.bf16.msra.mxu0 %v2872_v63  ;;  %2118 = vmatpush1.bf16.msra.mxu1 %v2875_v0 }
 0x1a3   :  { %2037 = vmatprep.subr.bf16.mxu0 %v2880_v1  ;;  %2119 = vmatprep.subr.bf16.mxu1 %v2883_v2 }
 0x1a6   :  { %2038 = vmatpush1.bf16.msra.mxu0 %v2878_v3  ;;  %2120 = vmatpush1.bf16.msra.mxu1 %v2881_v4 }
 0x1a7   :  { %2039 = vmatprep.subr.bf16.mxu0 %v2886_v5  ;;  %2121 = vmatprep.subr.bf16.mxu1 %v2889_v6  ;;  %v2944_v6 = vld [vmem:[#allocation9 + $0x200] ss:$16 sps:$4 sm:$0xff]  }
 0x1aa   :  { %2040 = vmatpush1.bf16.msra.mxu0 %v2884_v7  ;;  %2122 = vmatpush1.bf16.msra.mxu1 %v2887_v8  ;;  %v2947_v7 = vld [vmem:[#allocation9 + $0x208] ss:$16 sps:$4 sm:$0xff]  }
 0x1ab   :  { %2041 = vmatprep.subr.bf16.mxu0 %v2892_v9  ;;  %2123 = vmatprep.subr.bf16.mxu1 %v2895_v10  ;;  %v2952_v9 = vld [vmem:[#allocation9 + $0x224] ss:$16 sps:$4 sm:$0xff]   ;;  %v2955_v10 = vld [vmem:[#allocation9 + $0x22c] ss:$16 sps:$4 sm:$0xff]  }
 0x1ae   :  { %2042 = vmatpush1.bf16.msra.mxu0 %v2890_v11  ;;  %2124 = vmatpush1.bf16.msra.mxu1 %v2893_v12  ;;  %v2950_v12 = vld [vmem:[#allocation9 + $0x220] ss:$16 sps:$4 sm:$0xff]  }
 0x1af   :  { %2043 = vmatprep.subr.bf16.mxu0 %v2898_v13  ;;  %2125 = vmatprep.subr.bf16.mxu1 %v2901_v18  ;;  %v2953_v13 = vld [vmem:[#allocation9 + $0x228] ss:$16 sps:$4 sm:$0xff]   ;;  %v2958_v18 = vld [vmem:[#allocation9 + $0x244] ss:$16 sps:$4 sm:$0xff]  }
 0x1b2   :  { %2044 = vmatpush1.bf16.msra.mxu0 %v2896_v19  ;;  %2126 = vmatpush1.bf16.msra.mxu1 %v2899_v20  ;;  %v2961_v19 = vld [vmem:[#allocation9 + $0x24c] ss:$16 sps:$4 sm:$0xff]   ;;  %v2956_v20 = vld [vmem:[#allocation9 + $0x240] ss:$16 sps:$4 sm:$0xff]  }
 0x1b3   :  { %2045 = vmatprep.subr.bf16.mxu0 %v2904_v21  ;;  %2127 = vmatprep.subr.bf16.mxu1 %v2907_v22  ;;  %v2959_v21 = vld [vmem:[#allocation9 + $0x248] ss:$16 sps:$4 sm:$0xff]   ;;  %v2964_v22 = vld [vmem:[#allocation9 + $0x264] ss:$16 sps:$4 sm:$0xff]  }
 0x1b6   :  { %2046 = vmatpush1.bf16.msra.mxu0 %v2902_v23  ;;  %2128 = vmatpush1.bf16.msra.mxu1 %v2905_v24  ;;  %v2967_v23 = vld [vmem:[#allocation9 + $0x26c] ss:$16 sps:$4 sm:$0xff]   ;;  %v2962_v24 = vld [vmem:[#allocation9 + $0x260] ss:$16 sps:$4 sm:$0xff]  }
 0x1b7   :  { %2047 = vmatprep.subr.bf16.mxu0 %v2910_v26  ;;  %2129 = vmatprep.subr.bf16.mxu1 %v2913_v27  ;;  %v2965_v26 = vld [vmem:[#allocation9 + $0x268] ss:$16 sps:$4 sm:$0xff]   ;;  %v2970_v27 = vld [vmem:[#allocation9 + $0x284] ss:$16 sps:$4 sm:$0xff]  }
 0x1ba   :  { %2048 = vmatpush1.bf16.msra.mxu0 %v2908_v28  ;;  %2130 = vmatpush1.bf16.msra.mxu1 %v2911_v29  ;;  %v2973_v28 = vld [vmem:[#allocation9 + $0x28c] ss:$16 sps:$4 sm:$0xff]   ;;  %v2968_v29 = vld [vmem:[#allocation9 + $0x280] ss:$16 sps:$4 sm:$0xff]  }
 0x1bb   :  { %2049 = vmatprep.subr.bf16.mxu0 %v2916_v31  ;;  %2131 = vmatprep.subr.bf16.mxu1 %v2919_v32  ;;  %v2971_v31 = vld [vmem:[#allocation9 + $0x288] ss:$16 sps:$4 sm:$0xff]   ;;  %v2976_v32 = vld [vmem:[#allocation9 + $0x2a4] ss:$16 sps:$4 sm:$0xff]  }
 0x1be   :  { %2050 = vmatpush1.bf16.msra.mxu0 %v2914_v33  ;;  %2132 = vmatpush1.bf16.msra.mxu1 %v2917_v34  ;;  %v2979_v33 = vld [vmem:[#allocation9 + $0x2ac] ss:$16 sps:$4 sm:$0xff]   ;;  %v2974_v34 = vld [vmem:[#allocation9 + $0x2a0] ss:$16 sps:$4 sm:$0xff]  }
 0x1bf   :  { %2051 = vmatprep.subr.bf16.mxu0 %v2922_v35  ;;  %2133 = vmatprep.subr.bf16.mxu1 %v2925_v37  ;;  %v2977_v35 = vld [vmem:[#allocation9 + $0x2a8] ss:$16 sps:$4 sm:$0xff]   ;;  %v2982_v37 = vld [vmem:[#allocation9 + $0x2c4] ss:$16 sps:$4 sm:$0xff]  }
 0x1c2   :  { %2052 = vmatpush1.bf16.msra.mxu0 %v2920_v38  ;;  %2134 = vmatpush1.bf16.msra.mxu1 %v2923_v39  ;;  %v2985_v38 = vld [vmem:[#allocation9 + $0x2cc] ss:$16 sps:$4 sm:$0xff]   ;;  %v2980_v39 = vld [vmem:[#allocation9 + $0x2c0] ss:$16 sps:$4 sm:$0xff]  }
 0x1c3   :  { %2053 = vmatprep.subr.bf16.mxu0 %v2928_v40  ;;  %2135 = vmatprep.subr.bf16.mxu1 %v2931_v14  ;;  %v2983_v40 = vld [vmem:[#allocation9 + $0x2c8] ss:$16 sps:$4 sm:$0xff]   ;;  %v2988_v14 = vld [vmem:[#allocation9 + $0x2e4] ss:$16 sps:$4 sm:$0xff]  }
 0x1c6   :  { %2054 = vmatpush1.bf16.msra.mxu0 %v2926_v41  ;;  %2136 = vmatpush1.bf16.msra.mxu1 %v2929_v42  ;;  %v2991_v41 = vld [vmem:[#allocation9 + $0x2ec] ss:$16 sps:$4 sm:$0xff]   ;;  %v2986_v42 = vld [vmem:[#allocation9 + $0x2e0] ss:$16 sps:$4 sm:$0xff]  }
 0x1c7   :  { %2055 = vmatprep.subr.bf16.mxu0 %v2934_v43  ;;  %2137 = vmatprep.subr.bf16.mxu1 %v2937_v44  ;;  %v2989_v43 = vld [vmem:[#allocation9 + $0x2e8] ss:$16 sps:$4 sm:$0xff]   ;;  %v2994_v44 = vld [vmem:[#allocation9 + $0x304] ss:$16 sps:$4 sm:$0xff]  }
 0x1ca   :  { %2056 = vmatpush1.bf16.msra.mxu0 %v2932_v45  ;;  %2138 = vmatpush1.bf16.msra.mxu1 %v2935_v16  ;;  %v2997_v45 = vld [vmem:[#allocation9 + $0x30c] ss:$16 sps:$4 sm:$0xff]   ;;  %v2992_v16 = vld [vmem:[#allocation9 + $0x300] ss:$16 sps:$4 sm:$0xff]  }
 0x1cb   :  { %2057 = vmatprep.subr.bf16.mxu0 %v2940_v46  ;;  %2139 = vmatprep.subr.bf16.mxu1 %v2943_v47  ;;  %v2995_v46 = vld [vmem:[#allocation9 + $0x308] ss:$16 sps:$4 sm:$0xff]   ;;  %v3000_v47 = vld [vmem:[#allocation9 + $0x324] ss:$16 sps:$4 sm:$0xff]  }
 0x1ce   :  { %2058 = vmatpush1.bf16.msra.mxu0 %v2938_v48  ;;  %2140 = vmatpush1.bf16.msra.mxu1 %v2941_v49  ;;  %v3003_v48 = vld [vmem:[#allocation9 + $0x32c] ss:$16 sps:$4 sm:$0xff]   ;;  %v2998_v49 = vld [vmem:[#allocation9 + $0x320] ss:$16 sps:$4 sm:$0xff]  }
 0x1cf   :  { %2068 = vmatprep.subr.bf16.mxu0 %v2946_v36  ;;  %2150 = vmatprep.subr.bf16.mxu1 %v2949_v50  ;;  %v3001_v36 = vld [vmem:[#allocation9 + $0x328] ss:$16 sps:$4 sm:$0xff]   ;;  %v3006_v50 = vld [vmem:[#allocation9 + $0x344] ss:$16 sps:$4 sm:$0xff]  }
 0x264   :  { %v1140_v55 = vpop.f32.mrb[0].mxu0  ;;  %v3366_v56 = vpop.f32.mrb[8].mxu1 }
 0x265   :  { %v2604_v57 = vadd.f32 %v1140_v55, %v408_v52  ;;  %v1142_v58 = vpop.f32.mrb[1].mxu0  ;;  %v1224_v59 = vpop.f32.mrb[9].mxu1  ;;  %v3009_v52 = vld [vmem:[#allocation9 + $0x34c] ss:$16 sps:$4 sm:$0xff]   ;;  %v3012_v55 = vld [vmem:[#allocation9 + $0x364] ss:$16 sps:$4 sm:$0xff]  }
 0x266   :  { %v2605_v60 = vadd.f32 %v1142_v58, %v412_v53  ;;  %v2607_v61 = vadd.f32 %v1224_v59, %v420_v54  ;;  %v1144_v62 = vpop.f32.mrb[2].mxu0  ;;  %v1226_v63 = vpop.f32.mrb[10].mxu1  ;;  %v3004_v53 = vld [vmem:[#allocation9 + $0x340] ss:$16 sps:$4 sm:$0xff]   ;;  %v3007_v54 = vld [vmem:[#allocation9 + $0x348] ss:$16 sps:$4 sm:$0xff]  }
 0x267   :  { %v1229_v0 = vmax.f32 %v2604_v57, 0.0  ;;  %v1145_v1 = vpop.f32.mrb[3].mxu0  ;;  %v1227_v2 = vpop.f32.mrb[11].mxu1  ;;  %v3015_v57 = vld [vmem:[#allocation9 + $0x36c] ss:$16 sps:$4 sm:$0xff]  }
 0x268   :  { %v1230_v3 = vmax.f32 %v2605_v60, 0.0  ;;  %v1232_v4 = vmax.f32 %v2607_v61, 0.0  ;;  %v3010_v58 = vld [vmem:[#allocation9 + $0x360] ss:$16 sps:$4 sm:$0xff]   ;;  %v3013_v59 = vld [vmem:[#allocation9 + $0x368] ss:$16 sps:$4 sm:$0xff]  }
 0x269   :  { %v1233_v8 = vpack.c.bf16 %v1229_v0, %v1229_v0  ;;  %v3018_v60 = vld [vmem:[#allocation9 + $0x384] ss:$16 sps:$4 sm:$0xff]   ;;  %v3021_v61 = vld [vmem:[#allocation9 + $0x38c] ss:$16 sps:$4 sm:$0xff]   ;;  %v3016_v62 = vld [vmem:[#allocation9 + $0x380] ss:$16 sps:$4 sm:$0xff]  }
 0x26a   :  { %v1234_v5 = vpack.c.bf16 %v1230_v3, %v1230_v3  ;;  %v1236_v11 = vpack.c.bf16 %v1232_v4, %v1232_v4  ;;  %v3019_v63 = vld [vmem:[#allocation9 + $0x388] ss:$16 sps:$4 sm:$0xff]   ;;  %v3024_v0 = vld [vmem:[#allocation9 + $0x3a4] ss:$16 sps:$4 sm:$0xff]   ;;  %v3027_v1 = vld [vmem:[#allocation9 + $0x3ac] ss:$16 sps:$4 sm:$0xff]   ;;  %v416_v4 = vrot.slane %v3358_v51, %v3353_v30 }
 0x26b   :  { %v3022_v2 = vld [vmem:[#allocation9 + $0x3a0] ss:$16 sps:$4 sm:$0xff]   ;;  %v3025_v3 = vld [vmem:[#allocation9 + $0x3a8] ss:$16 sps:$4 sm:$0xff]  }
 0x26c   :  { %2059 = vmatprep.mubr.bf16.mxu0 %v1234_v5  ;;  %2141 = vmatprep.mubr.bf16.mxu1 %v1234_v5  ;;  %v3030_v5 = vld [vmem:[#allocation9 + $0x3c4] ss:$16 sps:$4 sm:$0xff]  }
 0x26d   :  { %2060 = vmatmul.mubr.bf16.vlgmr.msra.gmra.mrb[4].mxu0 %v1233_v8  ;;  %2142 = vmatmul.mubr.bf16.vlgmr.msra.gmra.mrb[12].mxu1 %v1233_v8  ;;  %v3031_v8 = vld [vmem:[#allocation9 + $0x3c8] ss:$16 sps:$4 sm:$0xff]  }
 0x26e   :  { %2069 = vmatpush1.bf16.msra.mxu0 %v2944_v6  ;;  %2151 = vmatpush1.bf16.msra.mxu1 %v2947_v7  ;;  %v3033_v6 = vld [vmem:[#allocation9 + $0x3cc] ss:$16 sps:$4 sm:$0xff]   ;;  %v3028_v7 = vld [vmem:[#allocation9 + $0x3c0] ss:$16 sps:$4 sm:$0xff]  }
 0x26f   :  { %2100 = vmatprep.mubr.bf16.mxu0 %v1236_v11  ;;  %2182 = vmatprep.mubr.bf16.mxu1 %v1236_v11  ;;  %v3039_v11 = vld [vmem:[#allocation9 + $0x3ec] ss:$16 sps:$4 sm:$0xff]  }
 0x270   :  { %2070 = vmatprep.subr.bf16.mxu0 %v2952_v9  ;;  %2152 = vmatprep.subr.bf16.mxu1 %v2955_v10  ;;  %v2606_v9 = vadd.f32 %v3366_v56, %v416_v4  ;;  %v3036_v10 = vld [vmem:[#allocation9 + $0x3e4] ss:$16 sps:$4 sm:$0xff]   ;;  %v3042_v56 = vld [vmem:[%s3406_s7 + $0x4] ss:$16 sps:$4 sm:$0xff]  }
 0x272   :  { %2071 = vmatpush1.bf16.msra.mxu0 %v2950_v12  ;;  %2153 = vmatpush1.bf16.msra.mxu1 %v2953_v13  ;;  %v3034_v12 = vld [vmem:[#allocation9 + $0x3e0] ss:$16 sps:$4 sm:$0xff]   ;;  %v3037_v13 = vld [vmem:[#allocation9 + $0x3e8] ss:$16 sps:$4 sm:$0xff]  }
 0x273   :  { %2072 = vmatprep.subr.bf16.mxu0 %v2958_v18  ;;  %2154 = vmatprep.subr.bf16.mxu1 %v2961_v19  ;;  %v1231_v18 = vmax.f32 %v2606_v9, 0.0  ;;  %v2203_v19 = vld [vmem:[%s3407_s8] sm:$0xff] }
 0x274   :  { %2207 = vperm.xlu0 %2643, %v2203_v19  }
 0x275   :  { %v1235_v51 = vpack.c.bf16 %v1231_v18, %v1231_v18 }
 0x276   :  { %2073 = vmatpush1.bf16.msra.mxu0 %v2956_v20  ;;  %2155 = vmatpush1.bf16.msra.mxu1 %v2959_v21  ;;  %v2204_v20 = vld [vmem:[%s3407_s8 + $0x8] sm:$0xff] }
 0x277   :  { %2074 = vmatprep.subr.bf16.mxu0 %v2964_v22  ;;  %2156 = vmatprep.subr.bf16.mxu1 %v2967_v23  ;;  %v1365_v21 = vld [vmem:[#allocation10] sm:$0xf] }
 0x278   :  { %2212 = vperm.xlu0 %2643, %v2204_v20   ;;  %v1370_v22 = vrot.slane %v1365_v21, %v3334_v15  ;;  %v1374_v23 = vrot.slane %v1365_v21, %v3339_v17 }
 0x27a   :  { %2075 = vmatpush1.bf16.msra.mxu0 %v2962_v24  ;;  %2157 = vmatpush1.bf16.msra.mxu1 %v2965_v26  ;;  %v1382_v24 = vrot.slane %v1365_v21, %v3346_v25 }
 0x27b   :  { %2076 = vmatprep.subr.bf16.mxu0 %v2970_v27  ;;  %2158 = vmatprep.subr.bf16.mxu1 %v2973_v28 }
 0x27e   :  { %2077 = vmatpush1.bf16.msra.mxu0 %v2968_v29  ;;  %2159 = vmatpush1.bf16.msra.mxu1 %v2971_v31 }
 0x27f   :  { %2078 = vmatprep.subr.bf16.mxu0 %v2976_v32  ;;  %2160 = vmatprep.subr.bf16.mxu1 %v2979_v33 }
 0x282   :  { %2079 = vmatpush1.bf16.msra.mxu0 %v2974_v34  ;;  %2161 = vmatpush1.bf16.msra.mxu1 %v2977_v35 }
 0x283   :  { %2080 = vmatprep.subr.bf16.mxu0 %v2982_v37  ;;  %2162 = vmatprep.subr.bf16.mxu1 %v2985_v38  ;;  %v1378_v38 = vrot.slane %v1365_v21, %v3353_v30  ;;  %v3045_v30 = vld [vmem:[%s3406_s7 + $0xc] ss:$16 sps:$4 sm:$0xff]  }
 0x286   :  { %2081 = vmatpush1.bf16.msra.mxu0 %v2980_v39  ;;  %2163 = vmatpush1.bf16.msra.mxu1 %v2983_v40 }
 0x287   :  { %2082 = vmatprep.subr.bf16.mxu0 %v2988_v14  ;;  %2164 = vmatprep.subr.bf16.mxu1 %v2991_v41 }
 0x28a   :  { %2083 = vmatpush1.bf16.msra.mxu0 %v2986_v42  ;;  %2165 = vmatpush1.bf16.msra.mxu1 %v2989_v43 }
 0x28b   :  { %2084 = vmatprep.subr.bf16.mxu0 %v2994_v44  ;;  %2166 = vmatprep.subr.bf16.mxu1 %v2997_v45  ;;  %v3040_v44 = vld [vmem:[%s3406_s7] ss:$16 sps:$4 sm:$0xff]  }
 0x28e   :  { %2085 = vmatpush1.bf16.msra.mxu0 %v2992_v16  ;;  %2167 = vmatpush1.bf16.msra.mxu1 %v2995_v46  ;;  %v3043_v16 = vld [vmem:[%s3406_s7 + $0x8] ss:$16 sps:$4 sm:$0xff]  }
 0x28f   :  { %2086 = vmatprep.subr.bf16.mxu0 %v3000_v47  ;;  %2168 = vmatprep.subr.bf16.mxu1 %v3003_v48 }
 0x292   :  { %2087 = vmatpush1.bf16.msra.mxu0 %v2998_v49  ;;  %2169 = vmatpush1.bf16.msra.mxu1 %v3001_v36 }
 0x293   :  { %2088 = vmatprep.subr.bf16.mxu0 %v3006_v50  ;;  %2170 = vmatprep.subr.bf16.mxu1 %v3009_v52 }
 0x296   :  { %2089 = vmatpush1.bf16.msra.mxu0 %v3004_v53  ;;  %2171 = vmatpush1.bf16.msra.mxu1 %v3007_v54 }
 0x297   :  { %2090 = vmatprep.subr.bf16.mxu0 %v3012_v55  ;;  %2172 = vmatprep.subr.bf16.mxu1 %v3015_v57 }
 0x29a   :  { %2091 = vmatpush1.bf16.msra.mxu0 %v3010_v58  ;;  %2173 = vmatpush1.bf16.msra.mxu1 %v3013_v59 }
 0x29b   :  { %2092 = vmatprep.subr.bf16.mxu0 %v3018_v60  ;;  %2174 = vmatprep.subr.bf16.mxu1 %v3021_v61 }
 0x29e   :  { %2093 = vmatpush1.bf16.msra.mxu0 %v3016_v62  ;;  %2175 = vmatpush1.bf16.msra.mxu1 %v3019_v63 }
 0x29f   :  { %2094 = vmatprep.subr.bf16.mxu0 %v3024_v0  ;;  %2176 = vmatprep.subr.bf16.mxu1 %v3027_v1 }
 0x2a2   :  { %2095 = vmatpush1.bf16.msra.mxu0 %v3022_v2  ;;  %2177 = vmatpush1.bf16.msra.mxu1 %v3025_v3 }
 0x2a3   :  { %2096 = vmatprep.subr.bf16.mxu0 %v3030_v5  ;;  %2178 = vmatprep.subr.bf16.mxu1 %v3033_v6 }
 0x2a6   :  { %2097 = vmatpush1.bf16.msra.mxu0 %v3028_v7  ;;  %2179 = vmatpush1.bf16.msra.mxu1 %v3031_v8 }
 0x2a7   :  { %2098 = vmatprep.subr.bf16.mxu0 %v3036_v10  ;;  %2180 = vmatprep.subr.bf16.mxu1 %v3039_v11 }
 0x2aa   :  { %2099 = vmatpush1.bf16.msra.mxu0 %v3034_v12  ;;  %2181 = vmatpush1.bf16.msra.mxu1 %v3037_v13 }
 0x2ad   :  { %2101 = vmatmul.mubr.bf16.vlgmr.msra.gmra.mrb[4].mxu0 %v1235_v51  ;;  %2183 = vmatmul.mubr.bf16.vlgmr.msra.gmra.mrb[12].mxu1 %v1235_v51 }
 0x2ae   :  { %2267 = vmatprep.mubr.bf16.mxu0 %v3042_v56 }
 0x2f3   :  { %v2208_v46 = vpop.permute.xlu0 %2207 }
 0x2f7   :  { %v2213_v36 = vpop.permute.xlu0 %2212 }
 0x380   :  { %v2102_v26 = vpop.f32.mrb[4].mxu0  ;;  %v2184_v27 = vpop.f32.mrb[12].mxu1 }
 0x381   :  { %v2608_v28 = vadd.f32 %v2102_v26, %v1370_v22  ;;  %v2104_v29 = vpop.f32.mrb[5].mxu0  ;;  %v2186_v31 = vpop.f32.mrb[13].mxu1  ;;  %v2610_v42 = vadd.f32 %v2184_v27, %v1378_v38 }
 0x382   :  { %v2609_v32 = vadd.f32 %v2104_v29, %v1374_v23  ;;  %v2611_v33 = vadd.f32 %v2186_v31, %v1382_v24  ;;  %v2106_v34 = vpop.f32.mrb[6].mxu0  ;;  %v2188_v35 = vpop.f32.mrb[14].mxu1 }
 0x383   :  { %v2191_v37 = vmax.f32 %v2608_v28, 0.0  ;;  %v2107_v39 = vpop.f32.mrb[7].mxu0  ;;  %v2189_v40 = vpop.f32.mrb[15].mxu1  ;;  %v2193_v43 = vmax.f32 %v2610_v42, 0.0 }
 0x384   :  { %v2192_v14 = vmax.f32 %v2609_v32, 0.0  ;;  %v2194_v15 = vmax.f32 %v2611_v33, 0.0 }
 0x385   :  { %v2195_v17 = vpack.c.bf16 %v2191_v37, %v2191_v37  ;;  %v2197_v45 = vpack.c.bf16 %v2193_v43, %v2193_v43 }
 0x386   :  { %v2196_v41 = vpack.c.bf16 %v2192_v14, %v2192_v14  ;;  %v2198_v25 = vpack.c.bf16 %v2194_v15, %v2194_v15 }
 0x388   :  { %2235 = vmatprep.subr.bf16.mxu0 %v2196_v41 }
 0x389   :  { %2236 = vmatpush1.bf16.xpose.msra.mxu0 %v2195_v17 }
 0x38a   :  { %2276 = vmatprep.subr.bf16.mxu0 %v2198_v25 }
 0x390   :  { %2268 = vmatmul.mubr.bf16.vlgmr.msra.gmra.mrb[8].mxu0 %v3040_v44 }
 0x391   :  { %2277 = vmatpush1.bf16.xpose.msra.mxu0 %v2197_v45  ;;  %2308 = vmatprep.mubr.bf16.mxu0 %v3045_v30 }
 0x39c   :  { %2309 = vmatmul.mubr.bf16.vlgmr.msra.gmra.mrb[8].mxu0 %v3043_v16 }
 0x46f   :  { %v2310_v47 = vpop.f32.mrb[8].mxu0 }
 0x470   :  { %v2612_v48 = vadd.f32 %v2310_v47, %v2208_v46  ;;  %v2312_v49 = vpop.f32.mrb[9].mxu0 }
 0x471   :  { %v2313_v50 = vpop.f32.mrb[10].mxu0 }
 0x472   :  { %v2602_v52 = vclamps-f32 %v2612_v48, 1.0  ;;  %v2613_v53 = vadd.f32 %v2313_v50, %v2213_v36  ;;  %v2315_v54 = vpop.f32.mrb[11].mxu0 }
 0x474   :  { %2322 = vst.msk [vmem:[%s3408_s9] sm:$0xff] %vm2321_vm1, %v2602_v52  ;;  %v2603_v55 = vclamps-f32 %v2613_v53, 1.0 }
 0x476   :  { %2323 = vst.msk [vmem:[%s3408_s9 + $0x8] sm:$0xff] %vm2321_vm1, %v2603_v55 }
 0x477   :  { %2328 = vsyncpa [#allocation3], 1 }
 0x478   :  { %2329 = vsyncpa [#allocation5], 1 }
 0x479   :  { %2330 = vsyncpa [#allocation8], 1 }
 0x47a   :  { %2331 = vsyncpa [#allocation11], 1 }

// kernel: tpu_custom_call.1
= control target key start
LH: loop header
LB: loop body
LE: loop exit
PB: predicated region body
PF: predicated region fallthrough
CT: control target
= control target key end

     0   :  { %14 = vsyncpa [#allocation3], 0  ;;  %s3399_s0 = inlined_call_operand.vmem [shape: f32[8,32], index: 0, kind: input, shape index: {}]   ;;  %s3400_s1 = inlined_call_operand.hbm [shape: bf16[32,512], index: 1, kind: input, shape index: {}]   ;;  %s3401_s2 = inlined_call_operand.hbm [shape: f32[1,512], index: 2, kind: input, shape index: {}]   ;;  %s3402_s3 = inlined_call_operand.hbm [shape: bf16[512,512], index: 3, kind: input, shape index: {}]   ;;  %s3403_s4 = inlined_call_operand.hbm [shape: f32[1,512], index: 4, kind: input, shape index: {}]   ;;  %s3404_s5 = inlined_call_operand.hbm [shape: bf16[512,512], index: 5, kind: input, shape index: {}]   ;;  %s3405_s6 = inlined_call_operand.hbm [shape: f32[1,512], index: 6, kind: input, shape index: {}]   ;;  %s3406_s7 = inlined_call_operand.vmem [shape: bf16[16,512], index: 7, kind: input, shape index: {}]   ;;  %s3407_s8 = inlined_call_operand.vmem [shape: f32[16,1], index: 8, kind: input, shape index: {}]   ;;  %s3408_s9 = inlined_call_operand.vmem [shape: f32[16,8], index: 9, kind: output, shape index: {}]  }
   0x1   :  { %15 = vsyncpa [#allocation5], 0 }
   0x2   :  { %16 = vsyncpa [#allocation8], 0 }
   0x3   :  { %17 = vsyncpa [#allocation11], 0  ;;  %s3186_s30 = smov [#allocation4]   ;;  %s3187_s11 = smov [#allocation7]  }
   0x4   :  { %s38_s10 = sshll.u32 %s3186_s30, 4  ;;  %s60_s12 = sshll.u32 %s3187_s11, 4  ;;  %s39_s10 = int_to_ptr.vmem [resolvable:$true] %s38_s10  ;;  %s61_s12 = int_to_ptr.vmem [resolvable:$true] %s60_s12 }
   0x5   :  { %s3046_s15 = scalar_lea.hbm %s3401_s2, 64 }
   0x6   :  { %p3047_p0 = scmp.ne.s32.totalorder %s3401_s2, %s3046_s15  ;;  %p3050_p1 = scmp.lt.u32.totalorder %s3046_s15, %s3401_s2 }
   0x8   :  { %p3052_p2 = pnand %p3050_p1, %p3047_p0 }
   0xa   :  { %3055 = shalt.err (!%p3052_p2)
}
   0xb   :  { %s3056_s20 = scalar_lea.vmem %s39_s10, 64  ;;  %p3061_p4 = scmp.lt.s32.totalorder %s39_s10, %s39_s10 }
   0xc   :  { %p3057_p3 = scmp.ne.s32.totalorder %s39_s10, %s3056_s20  ;;  %p3062_p5 = scmp.lt.s32.totalorder %s3056_s20, %s3056_s20 }
   0xe   :  { %p3063_p6 = por %p3062_p5, %p3061_p4 }
  0x10   :  { %p3064_p7 = pnand %p3063_p6, %p3057_p3 }
  0x12   :  { %3067 = shalt.err (!%p3064_p7)
}
  0x13   :  { %41 = dma.hbm_to_vmem [thread:$0]  %s3401_s2, 64, %s39_s10, [#allocation5]  }
  0x14   :  { %s3068_s25 = scalar_lea.hbm %s3403_s4, 64 }
  0x15   :  { %p3069_p8 = scmp.ne.s32.totalorder %s3403_s4, %s3068_s25  ;;  %p3072_p9 = scmp.lt.u32.totalorder %s3068_s25, %s3403_s4 }
  0x17   :  { %p3074_p10 = pnand %p3072_p9, %p3069_p8 }
  0x19   :  { %3077 = shalt.err (!%p3074_p10)
}
  0x1a   :  { %s3078_s30 = scalar_lea.vmem %s61_s12, 64  ;;  %p3083_p12 = scmp.lt.s32.totalorder %s61_s12, %s61_s12 }
  0x1b   :  { %p3079_p11 = scmp.ne.s32.totalorder %s61_s12, %s3078_s30  ;;  %p3084_p13 = scmp.lt.s32.totalorder %s3078_s30, %s3078_s30 }
  0x1d   :  { %p3085_p0 = por %p3084_p13, %p3083_p12 }
  0x1f   :  { %p3086_p1 = pnand %p3085_p0, %p3079_p11 }
  0x21   :  { %3089 = shalt.err (!%p3086_p1)
}
  0x22   :  { %63 = dma.hbm_to_vmem [thread:$0]  %s3403_s4, 64, %s61_s12, [#allocation8]  }
  0x23   :  { %s3188_s11 = smov [#allocation2]   ;;  %s3090_s16 = scalar_lea.hbm %s3400_s1, 1024 }
  0x24   :  { %s25_s13 = sshll.u32 %s3188_s11, 4  ;;  %p3091_p2 = scmp.ne.s32.totalorder %s3400_s1, %s3090_s16  ;;  %s26_s13 = int_to_ptr.vmem [resolvable:$true] %s25_s13 }
  0x25   :  { %p3094_p3 = scmp.lt.u32.totalorder %s3090_s16, %s3400_s1 }
  0x27   :  { %p3096_p4 = pnand %p3094_p3, %p3091_p2 }
  0x29   :  { %3099 = shalt.err (!%p3096_p4)
}
  0x2a   :  { %s3100_s21 = scalar_lea.vmem %s26_s13, 1024  ;;  %p3105_p6 = scmp.lt.s32.totalorder %s26_s13, %s26_s13 }
  0x2b   :  { %p3101_p5 = scmp.ne.s32.totalorder %s26_s13, %s3100_s21  ;;  %p3106_p7 = scmp.lt.s32.totalorder %s3100_s21, %s3100_s21 }
  0x2d   :  { %p3107_p8 = por %p3106_p7, %p3105_p6 }
  0x2f   :  { %p3108_p9 = pnand %p3107_p8, %p3101_p5 }
  0x31   :  { %3111 = shalt.err (!%p3108_p9)
}
  0x32   :  { %s3189_s4 = smov 256   ;;  %s3190_s12 = smov 16  }
  0x33   :  { %31 = dma.hbm_to_vmem [thread:$0]  %s3400_s1, 1024, %s26_s13, [#allocation3], %s3189_s4, %s3189_s4, %s3190_s12  }
  0x34   :  { %s3191_s24 = smov [#allocation6]   ;;  %s3192_s26 = smov [#allocation9]  }
  0x35   :  { %s47_s25 = sshll.u32 %s3191_s24, 4  ;;  %s69_s27 = sshll.u32 %s3192_s26, 4  ;;  %s48_s25 = int_to_ptr.vmem [resolvable:$true] %s47_s25  ;;  %s70_s27 = int_to_ptr.vmem [resolvable:$true] %s69_s27 }
  0x36   :  { %s3112_s30 = scalar_lea.hbm %s3402_s3, 16384 }
  0x37   :  { %p3113_p10 = scmp.ne.s32.totalorder %s3402_s3, %s3112_s30  ;;  %p3116_p11 = scmp.lt.u32.totalorder %s3112_s30, %s3402_s3 }
  0x39   :  { %p3118_p12 = pnand %p3116_p11, %p3113_p10 }
  0x3b   :  { %3121 = shalt.err (!%p3118_p12)
}
  0x3c   :  { %s3122_s1 = scalar_lea.vmem %s48_s25, 16384  ;;  %p3127_p0 = scmp.lt.s32.totalorder %s48_s25, %s48_s25 }
  0x3d   :  { %p3123_p13 = scmp.ne.s32.totalorder %s48_s25, %s3122_s1  ;;  %p3128_p1 = scmp.lt.s32.totalorder %s3122_s1, %s3122_s1 }
  0x3f   :  { %p3129_p2 = por %p3128_p1, %p3127_p0 }
  0x41   :  { %p3130_p3 = pnand %p3129_p2, %p3123_p13 }
  0x43   :  { %3133 = shalt.err (!%p3130_p3)
}
  0x44   :  { %53 = dma.hbm_to_vmem [thread:$0]  %s3402_s3, 16384, %s48_s25, [#allocation5], %s3189_s4, %s3189_s4, %s3190_s12  }
  0x45   :  { %s3134_s18 = scalar_lea.hbm %s3404_s5, 16384 }
  0x46   :  { %p3135_p4 = scmp.ne.s32.totalorder %s3404_s5, %s3134_s18  ;;  %p3138_p5 = scmp.lt.u32.totalorder %s3134_s18, %s3404_s5 }
  0x48   :  { %p3140_p6 = pnand %p3138_p5, %p3135_p4 }
  0x4a   :  { %3143 = shalt.err (!%p3140_p6)
}
  0x4b   :  { %s3144_s23 = scalar_lea.vmem %s70_s27, 16384  ;;  %p3149_p8 = scmp.lt.s32.totalorder %s70_s27, %s70_s27 }
  0x4c   :  { %p3145_p7 = scmp.ne.s32.totalorder %s70_s27, %s3144_s23  ;;  %p3150_p9 = scmp.lt.s32.totalorder %s3144_s23, %s3144_s23 }
  0x4e   :  { %p3151_p10 = por %p3150_p9, %p3149_p8 }
  0x50   :  { %p3152_p11 = pnand %p3151_p10, %p3145_p7 }
  0x52   :  { %3155 = shalt.err (!%p3152_p11)
}
  0x53   :  { %75 = dma.hbm_to_vmem [thread:$0]  %s3404_s5, 16384, %s70_s27, [#allocation8], %s3189_s4, %s3189_s4, %s3190_s12  }
  0x54   :  { %s3193_s25 = smov [#allocation10]   ;;  %s3156_s30 = scalar_lea.hbm %s3405_s6, 64 }
  0x55   :  { %s82_s26 = sshll.u32 %s3193_s25, 4  ;;  %p3157_p12 = scmp.ne.s32.totalorder %s3405_s6, %s3156_s30  ;;  %s83_s26 = int_to_ptr.vmem [resolvable:$true] %s82_s26 }
  0x56   :  { %p3160_p13 = scmp.lt.u32.totalorder %s3156_s30, %s3405_s6 }
  0x58   :  { %p3162_p0 = pnand %p3160_p13, %p3157_p12 }
  0x5a   :  { %3165 = shalt.err (!%p3162_p0)
}
  0x5b   :  { %s3166_s1 = scalar_lea.vmem %s83_s26, 64  ;;  %p3171_p2 = scmp.lt.s32.totalorder %s83_s26, %s83_s26 }
  0x5c   :  { %p3167_p1 = scmp.ne.s32.totalorder %s83_s26, %s3166_s1  ;;  %p3172_p3 = scmp.lt.s32.totalorder %s3166_s1, %s3166_s1 }
  0x5e   :  { %p3173_p4 = por %p3172_p3, %p3171_p2 }
  0x60   :  { %p3174_p5 = pnand %p3173_p4, %p3167_p1 }
  0x62   :  { %3177 = shalt.err (!%p3174_p5)
}
  0x63   :  { %85 = dma.hbm_to_vmem [thread:$0]  %s3405_s6, 64, %s83_s26, [#allocation11]  }
  0x64   :  { %3178 = dma.done.wait [#allocation3], 1024  }
  0x65   :  { %3179 = vsyncadd [#allocation3], 4294966272 }
  0x66   :  { %3180 = dma.done.wait [#allocation5], 16448  }
  0x67   :  { %3181 = vsyncadd [#allocation5], 4294950848 }
  0x68   :  { %3182 = dma.done.wait [#allocation8], 16448  }
  0x69   :  { %3183 = vsyncadd [#allocation8], 4294950848 }
  0x6a   :  { %3184 = dma.done.wait [#allocation11], 64  }
  0x6b   :  { %3185 = vsyncadd [#allocation11], 4294967232  ;;  %v3194_v0 = vmov 0   ;;  %v2644_v1 = vld [vmem:[#allocation2 + $0x4] ss:$16 sps:$4 sm:$0xff]   ;;  %vm181_vm0 = vcmask 261120  }
  0x6c   :  { %217 = vmatprep.mubr.bf16.mxu1 %v3194_v0  ;;  %2643 = vset.pattern.permute.xlu0 %v3194_v0  ;;  %v2646_v2 = vld [vmem:[#allocation2] ss:$16 sps:$4 sm:$0xff]   ;;  %v2647_v3 = vld [vmem:[#allocation2 + $0x24] ss:$16 sps:$4 sm:$0xff]   ;;  %v2652_v6 = vld [vmem:[#allocation2 + $0xc] ss:$16 sps:$4 sm:$0xff]  }
  0x6d   :  { %185 = vmatprep.subr.bf16.mxu1 %v2644_v1  ;;  %v2649_v4 = vld [vmem:[#allocation2 + $0x20] ss:$16 sps:$4 sm:$0xff]   ;;  %v2656_v8 = vld [vmem:[#allocation6 + $0x4] ss:$16 sps:$4 sm:$0xff]   ;;  %v2655_v10 = vld [vmem:[#allocation2 + $0x2c] ss:$16 sps:$4 sm:$0xff]  }
  0x6e   :  { %186 = vmatpush1.bf16.msra.mxu1 %v2646_v2  ;;  %v109_v5 = vld [vmem:[%s3399_s0] sm:$0xff]  ;;  %v2650_v9 = vld [vmem:[#allocation2 + $0x8] ss:$16 sps:$4 sm:$0xff]   ;;  %1065 = vmatprep.subr.bf16.mxu0 %v2656_v8  ;;  %v2658_v18 = vld [vmem:[#allocation6 + $0x8] ss:$16 sps:$4 sm:$0xff]   ;;  %vm2321_vm1 = vcmask 64512  }
  0x6f   :  { %187 = vmatprep.subr.bf16.mxu1 %v2647_v3  ;;  %v110_v7 = vpack.c.bf16 %v109_v5, %v109_v5  ;;  %v2661_v11 = vld [vmem:[#allocation6] ss:$16 sps:$4 sm:$0xff]   ;;  %v2662_v12 = vld [vmem:[#allocation6 + $0x24] ss:$16 sps:$4 sm:$0xff]   ;;  %v2660_v16 = vld [vmem:[#allocation6 + $0xc] ss:$16 sps:$4 sm:$0xff]  }
  0x70   :  { %v2653_v13 = vld [vmem:[#allocation2 + $0x28] ss:$16 sps:$4 sm:$0xff]   ;;  %1066 = vmatpush1.bf16.msra.mxu0 %v2661_v11  ;;  %v2667_v14 = vld [vmem:[#allocation6 + $0x20] ss:$16 sps:$4 sm:$0xff]   ;;  %v2666_v20 = vld [vmem:[#allocation6 + $0x2c] ss:$16 sps:$4 sm:$0xff]  }
  0x71   :  { %v2668_v15 = vld [vmem:[#allocation6 + $0x44] ss:$16 sps:$4 sm:$0xff]   ;;  %1067 = vmatprep.subr.bf16.mxu0 %v2662_v12  ;;  %v2673_v17 = vld [vmem:[#allocation6 + $0x40] ss:$16 sps:$4 sm:$0xff]   ;;  %v2664_v21 = vld [vmem:[#allocation6 + $0x28] ss:$16 sps:$4 sm:$0xff]  }
  0x72   :  { %188 = vmatpush1.bf16.msra.mxu1 %v2649_v4  ;;  %v2674_v19 = vld [vmem:[#allocation6 + $0x64] ss:$16 sps:$4 sm:$0xff]   ;;  %v2679_v22 = vld [vmem:[#allocation6 + $0x60] ss:$16 sps:$4 sm:$0xff]   ;;  %v2672_v24 = vld [vmem:[#allocation6 + $0x4c] ss:$16 sps:$4 sm:$0xff]  }
  0x73   :  { %226 = vmatprep.subr.bf16.mxu1 %v2652_v6  ;;  %v2680_v23 = vld [vmem:[#allocation6 + $0x84] ss:$16 sps:$4 sm:$0xff]   ;;  %v2685_v25 = vld [vmem:[#allocation6 + $0x80] ss:$16 sps:$4 sm:$0xff]   ;;  %v2670_v26 = vld [vmem:[#allocation6 + $0x48] ss:$16 sps:$4 sm:$0xff]  }
  0x74   :  { %1068 = vmatpush1.bf16.msra.mxu0 %v2667_v14  ;;  %v2686_v27 = vld [vmem:[#allocation6 + $0xa4] ss:$16 sps:$4 sm:$0xff]   ;;  %v2678_v28 = vld [vmem:[#allocation6 + $0x6c] ss:$16 sps:$4 sm:$0xff]   ;;  %v2676_v29 = vld [vmem:[#allocation6 + $0x68] ss:$16 sps:$4 sm:$0xff]  }
  0x75   :  { %2340 = vmatmul.mubr.msk.bf16.vlgmr.msra.gmra.mrb[0].mxu1 %vm181_vm0, %v110_v7  ;;  %1069 = vmatprep.subr.bf16.mxu0 %v2668_v15  ;;  %v2691_v30 = vld [vmem:[#allocation6 + $0xa0] ss:$16 sps:$4 sm:$0xff]   ;;  %v2692_v31 = vld [vmem:[#allocation6 + $0xc4] ss:$16 sps:$4 sm:$0xff]   ;;  %v2684_v32 = vld [vmem:[#allocation6 + $0x8c] ss:$16 sps:$4 sm:$0xff]  }
  0x76   :  { %227 = vmatpush1.bf16.msra.mxu1 %v2650_v9  ;;  %258 = vmatprep.mubr.bf16.mxu1 %v3194_v0  ;;  %v2697_v33 = vld [vmem:[#allocation6 + $0xc0] ss:$16 sps:$4 sm:$0xff]   ;;  %v2682_v34 = vld [vmem:[#allocation6 + $0x88] ss:$16 sps:$4 sm:$0xff]   ;;  %v2698_v35 = vld [vmem:[#allocation6 + $0xe4] ss:$16 sps:$4 sm:$0xff]  }
  0x77   :  { %228 = vmatprep.subr.bf16.mxu1 %v2655_v10  ;;  %v2690_v36 = vld [vmem:[#allocation6 + $0xac] ss:$16 sps:$4 sm:$0xff]   ;;  %v2688_v37 = vld [vmem:[#allocation6 + $0xa8] ss:$16 sps:$4 sm:$0xff]   ;;  %v2703_v38 = vld [vmem:[#allocation6 + $0xe0] ss:$16 sps:$4 sm:$0xff]  }
  0x78   :  { %1070 = vmatpush1.bf16.msra.mxu0 %v2673_v17  ;;  %v2704_v39 = vld [vmem:[#allocation6 + $0x104] ss:$16 sps:$4 sm:$0xff]   ;;  %v2696_v40 = vld [vmem:[#allocation6 + $0xcc] ss:$16 sps:$4 sm:$0xff]   ;;  %v2709_v41 = vld [vmem:[#allocation6 + $0x100] ss:$16 sps:$4 sm:$0xff]  }
  0x79   :  { %1071 = vmatprep.subr.bf16.mxu0 %v2674_v19  ;;  %v2694_v42 = vld [vmem:[#allocation6 + $0xc8] ss:$16 sps:$4 sm:$0xff]   ;;  %v2710_v43 = vld [vmem:[#allocation6 + $0x124] ss:$16 sps:$4 sm:$0xff]   ;;  %v2702_v44 = vld [vmem:[#allocation6 + $0xec] ss:$16 sps:$4 sm:$0xff]  }
  0x7a   :  { %229 = vmatpush1.bf16.msra.mxu1 %v2653_v13  ;;  %v2700_v45 = vld [vmem:[#allocation6 + $0xe8] ss:$16 sps:$4 sm:$0xff]   ;;  %v2708_v46 = vld [vmem:[#allocation6 + $0x10c] ss:$16 sps:$4 sm:$0xff]   ;;  %v2715_v47 = vld [vmem:[#allocation6 + $0x120] ss:$16 sps:$4 sm:$0xff]   ;;  %v121_v13 = vlaneseq }
  0x7b   :  { %1147 = vmatprep.subr.bf16.mxu1 %v2660_v16  ;;  %v2716_v48 = vld [vmem:[#allocation6 + $0x144] ss:$16 sps:$4 sm:$0xff]   ;;  %v2721_v49 = vld [vmem:[#allocation6 + $0x140] ss:$16 sps:$4 sm:$0xff]   ;;  %v2706_v50 = vld [vmem:[#allocation6 + $0x108] ss:$16 sps:$4 sm:$0xff]  }
  0x7c   :  { %1072 = vmatpush1.bf16.msra.mxu0 %v2679_v22  ;;  %v2722_v51 = vld [vmem:[#allocation6 + $0x164] ss:$16 sps:$4 sm:$0xff]   ;;  %v2714_v52 = vld [vmem:[#allocation6 + $0x12c] ss:$16 sps:$4 sm:$0xff]   ;;  %v2727_v53 = vld [vmem:[#allocation6 + $0x160] ss:$16 sps:$4 sm:$0xff]  }
  0x7d   :  { %2341 = vmatmul.mubr.msk.bf16.vlgmr.msra.gmra.mrb[4].mxu1 %vm181_vm0, %v110_v7  ;;  %1073 = vmatprep.subr.bf16.mxu0 %v2680_v23  ;;  %v2712_v54 = vld [vmem:[#allocation6 + $0x128] ss:$16 sps:$4 sm:$0xff]   ;;  %v2728_v55 = vld [vmem:[#allocation6 + $0x184] ss:$16 sps:$4 sm:$0xff]   ;;  %v2720_v56 = vld [vmem:[#allocation6 + $0x14c] ss:$16 sps:$4 sm:$0xff]  }
  0x7e   :  { %1148 = vmatpush1.bf16.msra.mxu1 %v2658_v18  ;;  %v2733_v57 = vld [vmem:[#allocation6 + $0x180] ss:$16 sps:$4 sm:$0xff]   ;;  %v2718_v58 = vld [vmem:[#allocation6 + $0x148] ss:$16 sps:$4 sm:$0xff]   ;;  %v2734_v59 = vld [vmem:[#allocation6 + $0x1a4] ss:$16 sps:$4 sm:$0xff]  }
  0x7f   :  { %1149 = vmatprep.subr.bf16.mxu1 %v2666_v20  ;;  %v2726_v60 = vld [vmem:[#allocation6 + $0x16c] ss:$16 sps:$4 sm:$0xff]   ;;  %v2739_v61 = vld [vmem:[#allocation6 + $0x1a0] ss:$16 sps:$4 sm:$0xff]   ;;  %v2724_v62 = vld [vmem:[#allocation6 + $0x168] ss:$16 sps:$4 sm:$0xff]  }
  0x80   :  { %1074 = vmatpush1.bf16.msra.mxu0 %v2685_v25  ;;  %v2732_v63 = vld [vmem:[#allocation6 + $0x18c] ss:$16 sps:$4 sm:$0xff]   ;;  %v2730_v0 = vld [vmem:[#allocation6 + $0x188] ss:$16 sps:$4 sm:$0xff]   ;;  %v2740_v3 = vld [vmem:[#allocation6 + $0x1c4] ss:$16 sps:$4 sm:$0xff]  }
  0x81   :  { %1075 = vmatprep.subr.bf16.mxu0 %v2686_v27  ;;  %v2738_v1 = vld [vmem:[#allocation6 + $0x1ac] ss:$16 sps:$4 sm:$0xff]   ;;  %v2736_v2 = vld [vmem:[#allocation6 + $0x1a8] ss:$16 sps:$4 sm:$0xff]   ;;  %v2745_v6 = vld [vmem:[#allocation6 + $0x1c0] ss:$16 sps:$4 sm:$0xff]  }
  0x82   :  { %1150 = vmatpush1.bf16.msra.mxu1 %v2664_v21  ;;  %v2744_v4 = vld [vmem:[#allocation6 + $0x1cc] ss:$16 sps:$4 sm:$0xff]   ;;  %v2742_v5 = vld [vmem:[#allocation6 + $0x1c8] ss:$16 sps:$4 sm:$0xff]   ;;  %v2746_v7 = vld [vmem:[#allocation6 + $0x1e4] ss:$16 sps:$4 sm:$0xff]  }
  0x83   :  { %1151 = vmatprep.subr.bf16.mxu1 %v2672_v24  ;;  %v2750_v8 = vld [vmem:[#allocation6 + $0x1ec] ss:$16 sps:$4 sm:$0xff]   ;;  %v2748_v9 = vld [vmem:[#allocation6 + $0x1e8] ss:$16 sps:$4 sm:$0xff]   ;;  %v2751_v10 = vld [vmem:[#allocation6 + $0x1e0] ss:$16 sps:$4 sm:$0xff]  }
  0x84   :  { %1076 = vmatpush1.bf16.msra.mxu0 %v2691_v30  ;;  %v2754_v11 = vld [vmem:[#allocation6 + $0x204] ss:$16 sps:$4 sm:$0xff]   ;;  %v2757_v12 = vld [vmem:[#allocation6 + $0x20c] ss:$16 sps:$4 sm:$0xff]   ;;  %v3331_v14 = vshrl.u32 %v121_v13, 7 }
  0x85   :  { %1077 = vmatprep.subr.bf16.mxu0 %v2692_v31  ;;  %v3336_v16 = vld [vmem:[#allocation4] sm:$0xf]  ;;  %v2752_v30 = vld [vmem:[#allocation6 + $0x200] ss:$16 sps:$4 sm:$0xff]   ;;  %v2755_v31 = vld [vmem:[#allocation6 + $0x208] ss:$16 sps:$4 sm:$0xff]  }
  0x86   :  { %1152 = vmatpush1.bf16.msra.mxu1 %v2670_v26  ;;  %v3334_v15 = vsub.s32 0, %v3331_v14  ;;  %v3339_v17 = vsub.s32 1, %v3331_v14  ;;  %v3346_v25 = vsub.s32 3, %v3331_v14  ;;  %v2814_v13 = vld [vmem:[#allocation6 + $0x344] ss:$16 sps:$4 sm:$0xff]  }
  0x87   :  { %1153 = vmatprep.subr.bf16.mxu1 %v2678_v28 }
  0x88   :  { %1078 = vmatpush1.bf16.msra.mxu0 %v2697_v33  ;;  %v124_v18 = vrot.slane %v3336_v16, %v3334_v15  ;;  %v128_v19 = vrot.slane %v3336_v16, %v3339_v17 }
  0x89   :  { %1079 = vmatprep.subr.bf16.mxu0 %v2698_v35  ;;  %v2763_v35 = vld [vmem:[#allocation6 + $0x22c] ss:$16 sps:$4 sm:$0xff]  }
  0x8a   :  { %1154 = vmatpush1.bf16.msra.mxu1 %v2676_v29 }
  0x8b   :  { %1155 = vmatprep.subr.bf16.mxu1 %v2684_v32  ;;  %v136_v32 = vrot.slane %v3336_v16, %v3346_v25 }
  0x8c   :  { %1080 = vmatpush1.bf16.msra.mxu0 %v2703_v38  ;;  %v2758_v38 = vld [vmem:[#allocation6 + $0x220] ss:$16 sps:$4 sm:$0xff]  }
  0x8d   :  { %1081 = vmatprep.subr.bf16.mxu0 %v2704_v39  ;;  %v2761_v39 = vld [vmem:[#allocation6 + $0x228] ss:$16 sps:$4 sm:$0xff]  }
  0x8e   :  { %1156 = vmatpush1.bf16.msra.mxu1 %v2682_v34  ;;  %v2760_v34 = vld [vmem:[#allocation6 + $0x224] ss:$16 sps:$4 sm:$0xff]  }
  0x8f   :  { %1157 = vmatprep.subr.bf16.mxu1 %v2690_v36 }
  0x90   :  { %1082 = vmatpush1.bf16.msra.mxu0 %v2709_v41 }
  0x91   :  { %1083 = vmatprep.subr.bf16.mxu0 %v2710_v43  ;;  %v2769_v43 = vld [vmem:[#allocation6 + $0x24c] ss:$16 sps:$4 sm:$0xff]  }
  0x92   :  { %1158 = vmatpush1.bf16.msra.mxu1 %v2688_v37 }
  0x93   :  { %1159 = vmatprep.subr.bf16.mxu1 %v2696_v40 }
  0x94   :  { %1084 = vmatpush1.bf16.msra.mxu0 %v2715_v47  ;;  %v2767_v47 = vld [vmem:[#allocation6 + $0x248] ss:$16 sps:$4 sm:$0xff]  }
  0x95   :  { %1085 = vmatprep.subr.bf16.mxu0 %v2716_v48 }
  0x96   :  { %1160 = vmatpush1.bf16.msra.mxu1 %v2694_v42  ;;  %v2766_v42 = vld [vmem:[#allocation6 + $0x244] ss:$16 sps:$4 sm:$0xff]  }
  0x97   :  { %1161 = vmatprep.subr.bf16.mxu1 %v2702_v44 }
  0x98   :  { %1086 = vmatpush1.bf16.msra.mxu0 %v2721_v49  ;;  %v2772_v49 = vld [vmem:[#allocation6 + $0x264] ss:$16 sps:$4 sm:$0xff]  }
  0x99   :  { %1087 = vmatprep.subr.bf16.mxu0 %v2722_v51  ;;  %v2770_v51 = vld [vmem:[#allocation6 + $0x260] ss:$16 sps:$4 sm:$0xff]  }
  0x9a   :  { %1162 = vmatpush1.bf16.msra.mxu1 %v2700_v45 }
  0x9b   :  { %1163 = vmatprep.subr.bf16.mxu1 %v2708_v46  ;;  %v2764_v46 = vld [vmem:[#allocation6 + $0x240] ss:$16 sps:$4 sm:$0xff]  }
  0x9c   :  { %1088 = vmatpush1.bf16.msra.mxu0 %v2727_v53  ;;  %v2778_v53 = vld [vmem:[#allocation6 + $0x284] ss:$16 sps:$4 sm:$0xff]  }
  0x9d   :  { %1089 = vmatprep.subr.bf16.mxu0 %v2728_v55  ;;  %v2776_v55 = vld [vmem:[#allocation6 + $0x280] ss:$16 sps:$4 sm:$0xff]  }
  0x9e   :  { %1164 = vmatpush1.bf16.msra.mxu1 %v2706_v50  ;;  %v2775_v50 = vld [vmem:[#allocation6 + $0x26c] ss:$16 sps:$4 sm:$0xff]  }
  0x9f   :  { %1165 = vmatprep.subr.bf16.mxu1 %v2714_v52  ;;  %v2773_v52 = vld [vmem:[#allocation6 + $0x268] ss:$16 sps:$4 sm:$0xff]  }
  0xa0   :  { %1090 = vmatpush1.bf16.msra.mxu0 %v2733_v57  ;;  %v2784_v57 = vld [vmem:[#allocation6 + $0x2a4] ss:$16 sps:$4 sm:$0xff]  }
  0xa1   :  { %1091 = vmatprep.subr.bf16.mxu0 %v2734_v59  ;;  %v2782_v59 = vld [vmem:[#allocation6 + $0x2a0] ss:$16 sps:$4 sm:$0xff]  }
  0xa2   :  { %1166 = vmatpush1.bf16.msra.mxu1 %v2712_v54  ;;  %v2781_v54 = vld [vmem:[#allocation6 + $0x28c] ss:$16 sps:$4 sm:$0xff]  }
  0xa3   :  { %1167 = vmatprep.subr.bf16.mxu1 %v2720_v56  ;;  %v2779_v56 = vld [vmem:[#allocation6 + $0x288] ss:$16 sps:$4 sm:$0xff]  }
  0xa4   :  { %1092 = vmatpush1.bf16.msra.mxu0 %v2739_v61  ;;  %v2790_v61 = vld [vmem:[#allocation6 + $0x2c4] ss:$16 sps:$4 sm:$0xff]  }
  0xa5   :  { %1093 = vmatprep.subr.bf16.mxu0 %v2740_v3  ;;  %v2794_v3 = vld [vmem:[#allocation6 + $0x2e0] ss:$16 sps:$4 sm:$0xff]  }
  0xa6   :  { %1168 = vmatpush1.bf16.msra.mxu1 %v2718_v58  ;;  %v2787_v58 = vld [vmem:[#allocation6 + $0x2ac] ss:$16 sps:$4 sm:$0xff]  }
  0xa7   :  { %1169 = vmatprep.subr.bf16.mxu1 %v2726_v60  ;;  %v2785_v60 = vld [vmem:[#allocation6 + $0x2a8] ss:$16 sps:$4 sm:$0xff]  }
  0xa8   :  { %1094 = vmatpush1.bf16.msra.mxu0 %v2745_v6  ;;  %v2805_v6 = vld [vmem:[#allocation6 + $0x30c] ss:$16 sps:$4 sm:$0xff]  }
  0xa9   :  { %1095 = vmatprep.subr.bf16.mxu0 %v2746_v7  ;;  %v2800_v7 = vld [vmem:[#allocation6 + $0x300] ss:$16 sps:$4 sm:$0xff]  }
  0xaa   :  { %1170 = vmatpush1.bf16.msra.mxu1 %v2724_v62  ;;  %v2793_v62 = vld [vmem:[#allocation6 + $0x2cc] ss:$16 sps:$4 sm:$0xff]  }
  0xab   :  { %1171 = vmatprep.subr.bf16.mxu1 %v2732_v63  ;;  %v2788_v63 = vld [vmem:[#allocation6 + $0x2c0] ss:$16 sps:$4 sm:$0xff]  }
  0xac   :  { %1096 = vmatpush1.bf16.msra.mxu0 %v2751_v10  ;;  %v2811_v10 = vld [vmem:[#allocation6 + $0x32c] ss:$16 sps:$4 sm:$0xff]  }
  0xad   :  { %1106 = vmatprep.subr.bf16.mxu0 %v2754_v11  ;;  %v2806_v11 = vld [vmem:[#allocation6 + $0x320] ss:$16 sps:$4 sm:$0xff]  }
  0xae   :  { %1172 = vmatpush1.bf16.msra.mxu1 %v2730_v0  ;;  %v2791_v0 = vld [vmem:[#allocation6 + $0x2c8] ss:$16 sps:$4 sm:$0xff]  }
  0xaf   :  { %1173 = vmatprep.subr.bf16.mxu1 %v2738_v1  ;;  %v2796_v1 = vld [vmem:[#allocation6 + $0x2e4] ss:$16 sps:$4 sm:$0xff]  }
  0xb2   :  { %1174 = vmatpush1.bf16.msra.mxu1 %v2736_v2  ;;  %v2799_v2 = vld [vmem:[#allocation6 + $0x2ec] ss:$16 sps:$4 sm:$0xff]  }
  0xb3   :  { %1175 = vmatprep.subr.bf16.mxu1 %v2744_v4  ;;  %v2797_v4 = vld [vmem:[#allocation6 + $0x2e8] ss:$16 sps:$4 sm:$0xff]  }
  0xb6   :  { %1176 = vmatpush1.bf16.msra.mxu1 %v2742_v5  ;;  %v2802_v5 = vld [vmem:[#allocation6 + $0x304] ss:$16 sps:$4 sm:$0xff]  }
  0xb7   :  { %1177 = vmatprep.subr.bf16.mxu1 %v2750_v8  ;;  %v2803_v8 = vld [vmem:[#allocation6 + $0x308] ss:$16 sps:$4 sm:$0xff]  }
  0xba   :  { %1178 = vmatpush1.bf16.msra.mxu1 %v2748_v9  ;;  %v2808_v9 = vld [vmem:[#allocation6 + $0x324] ss:$16 sps:$4 sm:$0xff]  }
  0xbb   :  { %1188 = vmatprep.subr.bf16.mxu1 %v2757_v12  ;;  %v2809_v12 = vld [vmem:[#allocation6 + $0x328] ss:$16 sps:$4 sm:$0xff]  }
 0x148   :  { %v219_v20 = vpop.f32.mrb[0].mxu1 }
 0x149   :  { %v220_v21 = vadd.f32 %v219_v20, %v124_v18  ;;  %v221_v22 = vpop.f32.mrb[1].mxu1  ;;  %v2817_v18 = vld [vmem:[#allocation6 + $0x34c] ss:$16 sps:$4 sm:$0xff]   ;;  %v2815_v20 = vld [vmem:[#allocation6 + $0x348] ss:$16 sps:$4 sm:$0xff]  }
 0x14a   :  { %v222_v23 = vadd.f32 %v221_v22, %v128_v19  ;;  %v223_v24 = vpop.f32.mrb[2].mxu1  ;;  %v2812_v19 = vld [vmem:[#allocation6 + $0x340] ss:$16 sps:$4 sm:$0xff]   ;;  %v2823_v22 = vld [vmem:[#allocation6 + $0x36c] ss:$16 sps:$4 sm:$0xff]  }
 0x14b   :  { %v267_v26 = vmax.f32 %v220_v21, 0.0  ;;  %v224_v27 = vpop.f32.mrb[3].mxu1  ;;  %v2820_v21 = vld [vmem:[#allocation6 + $0x364] ss:$16 sps:$4 sm:$0xff]   ;;  %v2821_v24 = vld [vmem:[#allocation6 + $0x368] ss:$16 sps:$4 sm:$0xff]  }
 0x14c   :  { %v268_v28 = vmax.f32 %v222_v23, 0.0  ;;  %v2818_v23 = vld [vmem:[#allocation6 + $0x360] ss:$16 sps:$4 sm:$0xff]   ;;  %v2829_v27 = vld [vmem:[#allocation6 + $0x38c] ss:$16 sps:$4 sm:$0xff]  }
 0x14d   :  { %v271_v33 = vpack.c.bf16 %v267_v26, %v267_v26  ;;  %v2826_v26 = vld [vmem:[#allocation6 + $0x384] ss:$16 sps:$4 sm:$0xff]  }
 0x14e   :  { %v272_v29 = vpack.c.bf16 %v268_v28, %v268_v28  ;;  %v2824_v28 = vld [vmem:[#allocation6 + $0x380] ss:$16 sps:$4 sm:$0xff]  }
 0x150   :  { %1097 = vmatprep.mubr.bf16.mxu0 %v272_v29  ;;  %1179 = vmatprep.mubr.bf16.mxu1 %v272_v29  ;;  %v3350_v36 = vpop.f32.mrb[4].mxu1  ;;  %v2827_v29 = vld [vmem:[#allocation6 + $0x388] ss:$16 sps:$4 sm:$0xff]  }
 0x151   :  { %1098 = vmatmul.mubr.bf16.vlgmr.msra.gmra.mrb[0].mxu0 %v271_v33  ;;  %1180 = vmatmul.mubr.bf16.vlgmr.msra.gmra.mrb[8].mxu1 %v271_v33  ;;  %v262_v37 = vpop.f32.mrb[5].mxu1  ;;  %v2830_v33 = vld [vmem:[#allocation6 + $0x3a0] ss:$16 sps:$4 sm:$0xff]  }
 0x152   :  { %1107 = vmatpush1.bf16.msra.mxu0 %v2752_v30  ;;  %1189 = vmatpush1.bf16.msra.mxu1 %v2755_v31  ;;  %v263_v40 = vadd.f32 %v262_v37, %v136_v32  ;;  %v264_v41 = vpop.f32.mrb[6].mxu1  ;;  %v3353_v30 = vsub.s32 2, %v3331_v14  ;;  %v2832_v31 = vld [vmem:[#allocation6 + $0x3a4] ss:$16 sps:$4 sm:$0xff]   ;;  %v2835_v32 = vld [vmem:[#allocation6 + $0x3ac] ss:$16 sps:$4 sm:$0xff]  }
 0x153   :  { %1108 = vmatprep.subr.bf16.mxu0 %v2760_v34  ;;  %1190 = vmatprep.subr.bf16.mxu1 %v2763_v35  ;;  %v265_v44 = vpop.f32.mrb[7].mxu1  ;;  %v2833_v34 = vld [vmem:[#allocation6 + $0x3a8] ss:$16 sps:$4 sm:$0xff]   ;;  %v2838_v37 = vld [vmem:[#allocation6 + $0x3c4] ss:$16 sps:$4 sm:$0xff]  }
 0x154   :  { %v270_v45 = vmax.f32 %v263_v40, 0.0  ;;  %v132_v35 = vrot.slane %v3336_v16, %v3353_v30  ;;  %v2839_v40 = vld [vmem:[#allocation6 + $0x3c8] ss:$16 sps:$4 sm:$0xff]   ;;  %v2844_v41 = vld [vmem:[#allocation6 + $0x3e4] ss:$16 sps:$4 sm:$0xff]  }
 0x155   :  { %v2845_v44 = vld [vmem:[#allocation6 + $0x3e8] ss:$16 sps:$4 sm:$0xff]  }
 0x156   :  { %1109 = vmatpush1.bf16.msra.mxu0 %v2758_v38  ;;  %1191 = vmatpush1.bf16.msra.mxu1 %v2761_v39  ;;  %v274_v48 = vpack.c.bf16 %v270_v45, %v270_v45  ;;  %v2841_v38 = vld [vmem:[#allocation6 + $0x3cc] ss:$16 sps:$4 sm:$0xff]   ;;  %v2836_v39 = vld [vmem:[#allocation6 + $0x3c0] ss:$16 sps:$4 sm:$0xff]   ;;  %v261_v14 = vadd.f32 %v3350_v36, %v132_v35  ;;  %v2850_v16 = vld [vmem:[#allocation9 + $0x4] ss:$16 sps:$4 sm:$0xff]  }
 0x157   :  { %1110 = vmatprep.subr.bf16.mxu0 %v2766_v42  ;;  %1192 = vmatprep.subr.bf16.mxu1 %v2769_v43  ;;  %v2847_v42 = vld [vmem:[#allocation6 + $0x3ec] ss:$16 sps:$4 sm:$0xff]   ;;  %v2842_v43 = vld [vmem:[#allocation6 + $0x3e0] ss:$16 sps:$4 sm:$0xff]   ;;  %v2856_v36 = vld [vmem:[#allocation9 + $0x24] ss:$16 sps:$4 sm:$0xff]  }
 0x158   :  { %1138 = vmatprep.mubr.bf16.mxu0 %v274_v48  ;;  %1220 = vmatprep.mubr.bf16.mxu1 %v274_v48  ;;  %v269_v45 = vmax.f32 %v261_v14, 0.0  ;;  %v2851_v48 = vld [vmem:[#allocation9 + $0x8] ss:$16 sps:$4 sm:$0xff]   ;;  %v2922_v35 = vld [vmem:[#allocation9 + $0x184] ss:$16 sps:$4 sm:$0xff]  }
 0x159   :  { %v2931_v14 = vld [vmem:[#allocation9 + $0x1ac] ss:$16 sps:$4 sm:$0xff]  }
 0x15a   :  { %1111 = vmatpush1.bf16.msra.mxu0 %v2764_v46  ;;  %1193 = vmatpush1.bf16.msra.mxu1 %v2767_v47  ;;  %v2853_v46 = vld [vmem:[#allocation9 + $0xc] ss:$16 sps:$4 sm:$0xff]   ;;  %v2848_v47 = vld [vmem:[#allocation9] ss:$16 sps:$4 sm:$0xff]  }
 0x15b   :  { %1112 = vmatprep.subr.bf16.mxu0 %v2772_v49  ;;  %1194 = vmatprep.subr.bf16.mxu1 %v2775_v50  ;;  %v273_v49 = vpack.c.bf16 %v269_v45, %v269_v45  ;;  %v2859_v50 = vld [vmem:[#allocation9 + $0x2c] ss:$16 sps:$4 sm:$0xff]   ;;  %v2932_v45 = vld [vmem:[#allocation9 + $0x1c0] ss:$16 sps:$4 sm:$0xff]  }
 0x15e   :  { %1113 = vmatpush1.bf16.msra.mxu0 %v2770_v51  ;;  %1195 = vmatpush1.bf16.msra.mxu1 %v2773_v52  ;;  %v2854_v51 = vld [vmem:[#allocation9 + $0x20] ss:$16 sps:$4 sm:$0xff]   ;;  %v2857_v52 = vld [vmem:[#allocation9 + $0x28] ss:$16 sps:$4 sm:$0xff]  }
 0x15f   :  { %1114 = vmatprep.subr.bf16.mxu0 %v2778_v53  ;;  %1196 = vmatprep.subr.bf16.mxu1 %v2781_v54  ;;  %v2862_v53 = vld [vmem:[#allocation9 + $0x44] ss:$16 sps:$4 sm:$0xff]   ;;  %v2865_v54 = vld [vmem:[#allocation9 + $0x4c] ss:$16 sps:$4 sm:$0xff]  }
 0x162   :  { %1115 = vmatpush1.bf16.msra.mxu0 %v2776_v55  ;;  %1197 = vmatpush1.bf16.msra.mxu1 %v2779_v56  ;;  %v2860_v55 = vld [vmem:[#allocation9 + $0x40] ss:$16 sps:$4 sm:$0xff]   ;;  %v2863_v56 = vld [vmem:[#allocation9 + $0x48] ss:$16 sps:$4 sm:$0xff]  }
 0x163   :  { %1116 = vmatprep.subr.bf16.mxu0 %v2784_v57  ;;  %1198 = vmatprep.subr.bf16.mxu1 %v2787_v58  ;;  %v2868_v57 = vld [vmem:[#allocation9 + $0x64] ss:$16 sps:$4 sm:$0xff]   ;;  %v2871_v58 = vld [vmem:[#allocation9 + $0x6c] ss:$16 sps:$4 sm:$0xff]  }
 0x166   :  { %1117 = vmatpush1.bf16.msra.mxu0 %v2782_v59  ;;  %1199 = vmatpush1.bf16.msra.mxu1 %v2785_v60  ;;  %v2866_v59 = vld [vmem:[#allocation9 + $0x60] ss:$16 sps:$4 sm:$0xff]   ;;  %v2869_v60 = vld [vmem:[#allocation9 + $0x68] ss:$16 sps:$4 sm:$0xff]  }
 0x167   :  { %1118 = vmatprep.subr.bf16.mxu0 %v2790_v61  ;;  %1200 = vmatprep.subr.bf16.mxu1 %v2793_v62  ;;  %v2874_v61 = vld [vmem:[#allocation9 + $0x84] ss:$16 sps:$4 sm:$0xff]   ;;  %v2877_v62 = vld [vmem:[#allocation9 + $0x8c] ss:$16 sps:$4 sm:$0xff]  }
 0x16a   :  { %1119 = vmatpush1.bf16.msra.mxu0 %v2788_v63  ;;  %1201 = vmatpush1.bf16.msra.mxu1 %v2791_v0  ;;  %v2872_v63 = vld [vmem:[#allocation9 + $0x80] ss:$16 sps:$4 sm:$0xff]   ;;  %v2875_v0 = vld [vmem:[#allocation9 + $0x88] ss:$16 sps:$4 sm:$0xff]  }
 0x16b   :  { %1120 = vmatprep.subr.bf16.mxu0 %v2796_v1  ;;  %1202 = vmatprep.subr.bf16.mxu1 %v2799_v2  ;;  %v2880_v1 = vld [vmem:[#allocation9 + $0xa4] ss:$16 sps:$4 sm:$0xff]   ;;  %v2883_v2 = vld [vmem:[#allocation9 + $0xac] ss:$16 sps:$4 sm:$0xff]  }
 0x16e   :  { %1121 = vmatpush1.bf16.msra.mxu0 %v2794_v3  ;;  %1203 = vmatpush1.bf16.msra.mxu1 %v2797_v4  ;;  %v2878_v3 = vld [vmem:[#allocation9 + $0xa0] ss:$16 sps:$4 sm:$0xff]   ;;  %v2881_v4 = vld [vmem:[#allocation9 + $0xa8] ss:$16 sps:$4 sm:$0xff]  }
 0x16f   :  { %1122 = vmatprep.subr.bf16.mxu0 %v2802_v5  ;;  %1204 = vmatprep.subr.bf16.mxu1 %v2805_v6  ;;  %v2886_v5 = vld [vmem:[#allocation9 + $0xc4] ss:$16 sps:$4 sm:$0xff]   ;;  %v2889_v6 = vld [vmem:[#allocation9 + $0xcc] ss:$16 sps:$4 sm:$0xff]  }
 0x172   :  { %1123 = vmatpush1.bf16.msra.mxu0 %v2800_v7  ;;  %1205 = vmatpush1.bf16.msra.mxu1 %v2803_v8  ;;  %v2884_v7 = vld [vmem:[#allocation9 + $0xc0] ss:$16 sps:$4 sm:$0xff]   ;;  %v2887_v8 = vld [vmem:[#allocation9 + $0xc8] ss:$16 sps:$4 sm:$0xff]  }
 0x173   :  { %1124 = vmatprep.subr.bf16.mxu0 %v2808_v9  ;;  %1206 = vmatprep.subr.bf16.mxu1 %v2811_v10  ;;  %v2892_v9 = vld [vmem:[#allocation9 + $0xe4] ss:$16 sps:$4 sm:$0xff]   ;;  %v2895_v10 = vld [vmem:[#allocation9 + $0xec] ss:$16 sps:$4 sm:$0xff]  }
 0x176   :  { %1125 = vmatpush1.bf16.msra.mxu0 %v2806_v11  ;;  %1207 = vmatpush1.bf16.msra.mxu1 %v2809_v12  ;;  %v2890_v11 = vld [vmem:[#allocation9 + $0xe0] ss:$16 sps:$4 sm:$0xff]   ;;  %v2893_v12 = vld [vmem:[#allocation9 + $0xe8] ss:$16 sps:$4 sm:$0xff]  }
 0x177   :  { %1126 = vmatprep.subr.bf16.mxu0 %v2814_v13  ;;  %1208 = vmatprep.subr.bf16.mxu1 %v2817_v18  ;;  %v2898_v13 = vld [vmem:[#allocation9 + $0x104] ss:$16 sps:$4 sm:$0xff]   ;;  %v2901_v18 = vld [vmem:[#allocation9 + $0x10c] ss:$16 sps:$4 sm:$0xff]  }
 0x17a   :  { %1127 = vmatpush1.bf16.msra.mxu0 %v2812_v19  ;;  %1209 = vmatpush1.bf16.msra.mxu1 %v2815_v20  ;;  %v2896_v19 = vld [vmem:[#allocation9 + $0x100] ss:$16 sps:$4 sm:$0xff]   ;;  %v2899_v20 = vld [vmem:[#allocation9 + $0x108] ss:$16 sps:$4 sm:$0xff]  }
 0x17b   :  { %1128 = vmatprep.subr.bf16.mxu0 %v2820_v21  ;;  %1210 = vmatprep.subr.bf16.mxu1 %v2823_v22  ;;  %v2904_v21 = vld [vmem:[#allocation9 + $0x124] ss:$16 sps:$4 sm:$0xff]   ;;  %v2907_v22 = vld [vmem:[#allocation9 + $0x12c] ss:$16 sps:$4 sm:$0xff]  }
 0x17e   :  { %1129 = vmatpush1.bf16.msra.mxu0 %v2818_v23  ;;  %1211 = vmatpush1.bf16.msra.mxu1 %v2821_v24  ;;  %v2902_v23 = vld [vmem:[#allocation9 + $0x120] ss:$16 sps:$4 sm:$0xff]   ;;  %v2905_v24 = vld [vmem:[#allocation9 + $0x128] ss:$16 sps:$4 sm:$0xff]  }
 0x17f   :  { %1130 = vmatprep.subr.bf16.mxu0 %v2826_v26  ;;  %1212 = vmatprep.subr.bf16.mxu1 %v2829_v27  ;;  %v2910_v26 = vld [vmem:[#allocation9 + $0x144] ss:$16 sps:$4 sm:$0xff]   ;;  %v2913_v27 = vld [vmem:[#allocation9 + $0x14c] ss:$16 sps:$4 sm:$0xff]  }
 0x182   :  { %1131 = vmatpush1.bf16.msra.mxu0 %v2824_v28  ;;  %1213 = vmatpush1.bf16.msra.mxu1 %v2827_v29  ;;  %v2908_v28 = vld [vmem:[#allocation9 + $0x140] ss:$16 sps:$4 sm:$0xff]   ;;  %v2911_v29 = vld [vmem:[#allocation9 + $0x148] ss:$16 sps:$4 sm:$0xff]  }
 0x183   :  { %1132 = vmatprep.subr.bf16.mxu0 %v2832_v31  ;;  %1214 = vmatprep.subr.bf16.mxu1 %v2835_v32  ;;  %v2916_v31 = vld [vmem:[#allocation9 + $0x164] ss:$16 sps:$4 sm:$0xff]   ;;  %v2919_v32 = vld [vmem:[#allocation9 + $0x16c] ss:$16 sps:$4 sm:$0xff]  }
 0x186   :  { %1133 = vmatpush1.bf16.msra.mxu0 %v2830_v33  ;;  %1215 = vmatpush1.bf16.msra.mxu1 %v2833_v34  ;;  %v2914_v33 = vld [vmem:[#allocation9 + $0x160] ss:$16 sps:$4 sm:$0xff]   ;;  %v2917_v34 = vld [vmem:[#allocation9 + $0x168] ss:$16 sps:$4 sm:$0xff]  }
 0x187   :  { %1134 = vmatprep.subr.bf16.mxu0 %v2838_v37  ;;  %1216 = vmatprep.subr.bf16.mxu1 %v2841_v38  ;;  %v2925_v37 = vld [vmem:[#allocation9 + $0x18c] ss:$16 sps:$4 sm:$0xff]   ;;  %v2920_v38 = vld [vmem:[#allocation9 + $0x180] ss:$16 sps:$4 sm:$0xff]  }
 0x18a   :  { %1135 = vmatpush1.bf16.msra.mxu0 %v2836_v39  ;;  %1217 = vmatpush1.bf16.msra.mxu1 %v2839_v40  ;;  %v2923_v39 = vld [vmem:[#allocation9 + $0x188] ss:$16 sps:$4 sm:$0xff]   ;;  %v2928_v40 = vld [vmem:[#allocation9 + $0x1a4] ss:$16 sps:$4 sm:$0xff]  }
 0x18b   :  { %1136 = vmatprep.subr.bf16.mxu0 %v2844_v41  ;;  %1218 = vmatprep.subr.bf16.mxu1 %v2847_v42  ;;  %v2926_v41 = vld [vmem:[#allocation9 + $0x1a0] ss:$16 sps:$4 sm:$0xff]   ;;  %v2929_v42 = vld [vmem:[#allocation9 + $0x1a8] ss:$16 sps:$4 sm:$0xff]  }
 0x18e   :  { %1137 = vmatpush1.bf16.msra.mxu0 %v2842_v43  ;;  %1219 = vmatpush1.bf16.msra.mxu1 %v2845_v44  ;;  %v2934_v43 = vld [vmem:[#allocation9 + $0x1c4] ss:$16 sps:$4 sm:$0xff]   ;;  %v2937_v44 = vld [vmem:[#allocation9 + $0x1cc] ss:$16 sps:$4 sm:$0xff]  }
 0x18f   :  { %2027 = vmatprep.subr.bf16.mxu0 %v2850_v16  ;;  %2109 = vmatprep.subr.bf16.mxu1 %v2853_v46  ;;  %v2935_v16 = vld [vmem:[#allocation9 + $0x1c8] ss:$16 sps:$4 sm:$0xff]   ;;  %v2940_v46 = vld [vmem:[#allocation9 + $0x1e4] ss:$16 sps:$4 sm:$0xff]  }
 0x191   :  { %1139 = vmatmul.mubr.bf16.vlgmr.msra.gmra.mrb[0].mxu0 %v273_v49  ;;  %1221 = vmatmul.mubr.bf16.vlgmr.msra.gmra.mrb[8].mxu1 %v273_v49  ;;  %v2941_v49 = vld [vmem:[#allocation9 + $0x1e8] ss:$16 sps:$4 sm:$0xff]  }
 0x192   :  { %2028 = vmatpush1.bf16.msra.mxu0 %v2848_v47  ;;  %2110 = vmatpush1.bf16.msra.mxu1 %v2851_v48  ;;  %v2943_v47 = vld [vmem:[#allocation9 + $0x1ec] ss:$16 sps:$4 sm:$0xff]   ;;  %v2938_v48 = vld [vmem:[#allocation9 + $0x1e0] ss:$16 sps:$4 sm:$0xff]  }
 0x193   :  { %2029 = vmatprep.subr.bf16.mxu0 %v2856_v36  ;;  %2111 = vmatprep.subr.bf16.mxu1 %v2859_v50  ;;  %v2946_v36 = vld [vmem:[#allocation9 + $0x204] ss:$16 sps:$4 sm:$0xff]   ;;  %v2949_v50 = vld [vmem:[#allocation9 + $0x20c] ss:$16 sps:$4 sm:$0xff]  }
 0x196   :  { %2030 = vmatpush1.bf16.msra.mxu0 %v2854_v51  ;;  %2112 = vmatpush1.bf16.msra.mxu1 %v2857_v52  ;;  %v3358_v51 = vld [vmem:[#allocation7] sm:$0xf] }
 0x197   :  { %2031 = vmatprep.subr.bf16.mxu0 %v2862_v53  ;;  %2113 = vmatprep.subr.bf16.mxu1 %v2865_v54  ;;  %v408_v52 = vrot.slane %v3358_v51, %v3334_v15  ;;  %v412_v53 = vrot.slane %v3358_v51, %v3339_v17  ;;  %v420_v54 = vrot.slane %v3358_v51, %v3346_v25 }
 0x19a   :  { %2032 = vmatpush1.bf16.msra.mxu0 %v2860_v55  ;;  %2114 = vmatpush1.bf16.msra.mxu1 %v2863_v56 }
 0x19b   :  { %2033 = vmatprep.subr.bf16.mxu0 %v2868_v57  ;;  %2115 = vmatprep.subr.bf16.mxu1 %v2871_v58 }
 0x19e   :  { %2034 = vmatpush1.bf16.msra.mxu0 %v2866_v59  ;;  %2116 = vmatpush1.bf16.msra.mxu1 %v2869_v60 }
 0x19f   :  { %2035 = vmatprep.subr.bf16.mxu0 %v2874_v61  ;;  %2117 = vmatprep.subr.bf16.mxu1 %v2877_v62 }
 0x1a2   :  { %2036 = vmatpush1.bf16.msra.mxu0 %v2872_v63  ;;  %2118 = vmatpush1.bf16.msra.mxu1 %v2875_v0 }
 0x1a3   :  { %2037 = vmatprep.subr.bf16.mxu0 %v2880_v1  ;;  %2119 = vmatprep.subr.bf16.mxu1 %v2883_v2 }
 0x1a6   :  { %2038 = vmatpush1.bf16.msra.mxu0 %v2878_v3  ;;  %2120 = vmatpush1.bf16.msra.mxu1 %v2881_v4 }
 0x1a7   :  { %2039 = vmatprep.subr.bf16.mxu0 %v2886_v5  ;;  %2121 = vmatprep.subr.bf16.mxu1 %v2889_v6  ;;  %v2944_v6 = vld [vmem:[#allocation9 + $0x200] ss:$16 sps:$4 sm:$0xff]  }
 0x1aa   :  { %2040 = vmatpush1.bf16.msra.mxu0 %v2884_v7  ;;  %2122 = vmatpush1.bf16.msra.mxu1 %v2887_v8  ;;  %v2947_v7 = vld [vmem:[#allocation9 + $0x208] ss:$16 sps:$4 sm:$0xff]  }
 0x1ab   :  { %2041 = vmatprep.subr.bf16.mxu0 %v2892_v9  ;;  %2123 = vmatprep.subr.bf16.mxu1 %v2895_v10  ;;  %v2952_v9 = vld [vmem:[#allocation9 + $0x224] ss:$16 sps:$4 sm:$0xff]   ;;  %v2955_v10 = vld [vmem:[#allocation9 + $0x22c] ss:$16 sps:$4 sm:$0xff]  }
 0x1ae   :  { %2042 = vmatpush1.bf16.msra.mxu0 %v2890_v11  ;;  %2124 = vmatpush1.bf16.msra.mxu1 %v2893_v12  ;;  %v2950_v12 = vld [vmem:[#allocation9 + $0x220] ss:$16 sps:$4 sm:$0xff]  }
 0x1af   :  { %2043 = vmatprep.subr.bf16.mxu0 %v2898_v13  ;;  %2125 = vmatprep.subr.bf16.mxu1 %v2901_v18  ;;  %v2953_v13 = vld [vmem:[#allocation9 + $0x228] ss:$16 sps:$4 sm:$0xff]   ;;  %v2958_v18 = vld [vmem:[#allocation9 + $0x244] ss:$16 sps:$4 sm:$0xff]  }
 0x1b2   :  { %2044 = vmatpush1.bf16.msra.mxu0 %v2896_v19  ;;  %2126 = vmatpush1.bf16.msra.mxu1 %v2899_v20  ;;  %v2961_v19 = vld [vmem:[#allocation9 + $0x24c] ss:$16 sps:$4 sm:$0xff]   ;;  %v2956_v20 = vld [vmem:[#allocation9 + $0x240] ss:$16 sps:$4 sm:$0xff]  }
 0x1b3   :  { %2045 = vmatprep.subr.bf16.mxu0 %v2904_v21  ;;  %2127 = vmatprep.subr.bf16.mxu1 %v2907_v22  ;;  %v2959_v21 = vld [vmem:[#allocation9 + $0x248] ss:$16 sps:$4 sm:$0xff]   ;;  %v2964_v22 = vld [vmem:[#allocation9 + $0x264] ss:$16 sps:$4 sm:$0xff]  }
 0x1b6   :  { %2046 = vmatpush1.bf16.msra.mxu0 %v2902_v23  ;;  %2128 = vmatpush1.bf16.msra.mxu1 %v2905_v24  ;;  %v2967_v23 = vld [vmem:[#allocation9 + $0x26c] ss:$16 sps:$4 sm:$0xff]   ;;  %v2962_v24 = vld [vmem:[#allocation9 + $0x260] ss:$16 sps:$4 sm:$0xff]  }
 0x1b7   :  { %2047 = vmatprep.subr.bf16.mxu0 %v2910_v26  ;;  %2129 = vmatprep.subr.bf16.mxu1 %v2913_v27  ;;  %v2965_v26 = vld [vmem:[#allocation9 + $0x268] ss:$16 sps:$4 sm:$0xff]   ;;  %v2970_v27 = vld [vmem:[#allocation9 + $0x284] ss:$16 sps:$4 sm:$0xff]  }
 0x1ba   :  { %2048 = vmatpush1.bf16.msra.mxu0 %v2908_v28  ;;  %2130 = vmatpush1.bf16.msra.mxu1 %v2911_v29  ;;  %v2973_v28 = vld [vmem:[#allocation9 + $0x28c] ss:$16 sps:$4 sm:$0xff]   ;;  %v2968_v29 = vld [vmem:[#allocation9 + $0x280] ss:$16 sps:$4 sm:$0xff]  }
 0x1bb   :  { %2049 = vmatprep.subr.bf16.mxu0 %v2916_v31  ;;  %2131 = vmatprep.subr.bf16.mxu1 %v2919_v32  ;;  %v2971_v31 = vld [vmem:[#allocation9 + $0x288] ss:$16 sps:$4 sm:$0xff]   ;;  %v2976_v32 = vld [vmem:[#allocation9 + $0x2a4] ss:$16 sps:$4 sm:$0xff]  }
 0x1be   :  { %2050 = vmatpush1.bf16.msra.mxu0 %v2914_v33  ;;  %2132 = vmatpush1.bf16.msra.mxu1 %v2917_v34  ;;  %v2979_v33 = vld [vmem:[#allocation9 + $0x2ac] ss:$16 sps:$4 sm:$0xff]   ;;  %v2974_v34 = vld [vmem:[#allocation9 + $0x2a0] ss:$16 sps:$4 sm:$0xff]  }
 0x1bf   :  { %2051 = vmatprep.subr.bf16.mxu0 %v2922_v35  ;;  %2133 = vmatprep.subr.bf16.mxu1 %v2925_v37  ;;  %v2977_v35 = vld [vmem:[#allocation9 + $0x2a8] ss:$16 sps:$4 sm:$0xff]   ;;  %v2982_v37 = vld [vmem:[#allocation9 + $0x2c4] ss:$16 sps:$4 sm:$0xff]  }
 0x1c2   :  { %2052 = vmatpush1.bf16.msra.mxu0 %v2920_v38  ;;  %2134 = vmatpush1.bf16.msra.mxu1 %v2923_v39  ;;  %v2985_v38 = vld [vmem:[#allocation9 + $0x2cc] ss:$16 sps:$4 sm:$0xff]   ;;  %v2980_v39 = vld [vmem:[#allocation9 + $0x2c0] ss:$16 sps:$4 sm:$0xff]  }
 0x1c3   :  { %2053 = vmatprep.subr.bf16.mxu0 %v2928_v40  ;;  %2135 = vmatprep.subr.bf16.mxu1 %v2931_v14  ;;  %v2983_v40 = vld [vmem:[#allocation9 + $0x2c8] ss:$16 sps:$4 sm:$0xff]   ;;  %v2988_v14 = vld [vmem:[#allocation9 + $0x2e4] ss:$16 sps:$4 sm:$0xff]  }
 0x1c6   :  { %2054 = vmatpush1.bf16.msra.mxu0 %v2926_v41  ;;  %2136 = vmatpush1.bf16.msra.mxu1 %v2929_v42  ;;  %v2991_v41 = vld [vmem:[#allocation9 + $0x2ec] ss:$16 sps:$4 sm:$0xff]   ;;  %v2986_v42 = vld [vmem:[#allocation9 + $0x2e0] ss:$16 sps:$4 sm:$0xff]  }
 0x1c7   :  { %2055 = vmatprep.subr.bf16.mxu0 %v2934_v43  ;;  %2137 = vmatprep.subr.bf16.mxu1 %v2937_v44  ;;  %v2989_v43 = vld [vmem:[#allocation9 + $0x2e8] ss:$16 sps:$4 sm:$0xff]   ;;  %v2994_v44 = vld [vmem:[#allocation9 + $0x304] ss:$16 sps:$4 sm:$0xff]  }
 0x1ca   :  { %2056 = vmatpush1.bf16.msra.mxu0 %v2932_v45  ;;  %2138 = vmatpush1.bf16.msra.mxu1 %v2935_v16  ;;  %v2997_v45 = vld [vmem:[#allocation9 + $0x30c] ss:$16 sps:$4 sm:$0xff]   ;;  %v2992_v16 = vld [vmem:[#allocation9 + $0x300] ss:$16 sps:$4 sm:$0xff]  }
 0x1cb   :  { %2057 = vmatprep.subr.bf16.mxu0 %v2940_v46  ;;  %2139 = vmatprep.subr.bf16.mxu1 %v2943_v47  ;;  %v2995_v46 = vld [vmem:[#allocation9 + $0x308] ss:$16 sps:$4 sm:$0xff]   ;;  %v3000_v47 = vld [vmem:[#allocation9 + $0x324] ss:$16 sps:$4 sm:$0xff]  }
 0x1ce   :  { %2058 = vmatpush1.bf16.msra.mxu0 %v2938_v48  ;;  %2140 = vmatpush1.bf16.msra.mxu1 %v2941_v49  ;;  %v3003_v48 = vld [vmem:[#allocation9 + $0x32c] ss:$16 sps:$4 sm:$0xff]   ;;  %v2998_v49 = vld [vmem:[#allocation9 + $0x320] ss:$16 sps:$4 sm:$0xff]  }
 0x1cf   :  { %2068 = vmatprep.subr.bf16.mxu0 %v2946_v36  ;;  %2150 = vmatprep.subr.bf16.mxu1 %v2949_v50  ;;  %v3001_v36 = vld [vmem:[#allocation9 + $0x328] ss:$16 sps:$4 sm:$0xff]   ;;  %v3006_v50 = vld [vmem:[#allocation9 + $0x344] ss:$16 sps:$4 sm:$0xff]  }
 0x264   :  { %v1140_v55 = vpop.f32.mrb[0].mxu0  ;;  %v3366_v56 = vpop.f32.mrb[8].mxu1 }
 0x265   :  { %v2604_v57 = vadd.f32 %v1140_v55, %v408_v52  ;;  %v1142_v58 = vpop.f32.mrb[1].mxu0  ;;  %v1224_v59 = vpop.f32.mrb[9].mxu1  ;;  %v3009_v52 = vld [vmem:[#allocation9 + $0x34c] ss:$16 sps:$4 sm:$0xff]   ;;  %v3012_v55 = vld [vmem:[#allocation9 + $0x364] ss:$16 sps:$4 sm:$0xff]  }
 0x266   :  { %v2605_v60 = vadd.f32 %v1142_v58, %v412_v53  ;;  %v2607_v61 = vadd.f32 %v1224_v59, %v420_v54  ;;  %v1144_v62 = vpop.f32.mrb[2].mxu0  ;;  %v1226_v63 = vpop.f32.mrb[10].mxu1  ;;  %v3004_v53 = vld [vmem:[#allocation9 + $0x340] ss:$16 sps:$4 sm:$0xff]   ;;  %v3007_v54 = vld [vmem:[#allocation9 + $0x348] ss:$16 sps:$4 sm:$0xff]  }
 0x267   :  { %v1229_v0 = vmax.f32 %v2604_v57, 0.0  ;;  %v1145_v1 = vpop.f32.mrb[3].mxu0  ;;  %v1227_v2 = vpop.f32.mrb[11].mxu1  ;;  %v3015_v57 = vld [vmem:[#allocation9 + $0x36c] ss:$16 sps:$4 sm:$0xff]  }
 0x268   :  { %v1230_v3 = vmax.f32 %v2605_v60, 0.0  ;;  %v1232_v4 = vmax.f32 %v2607_v61, 0.0  ;;  %v3010_v58 = vld [vmem:[#allocation9 + $0x360] ss:$16 sps:$4 sm:$0xff]   ;;  %v3013_v59 = vld [vmem:[#allocation9 + $0x368] ss:$16 sps:$4 sm:$0xff]  }
 0x269   :  { %v1233_v8 = vpack.c.bf16 %v1229_v0, %v1229_v0  ;;  %v3018_v60 = vld [vmem:[#allocation9 + $0x384] ss:$16 sps:$4 sm:$0xff]   ;;  %v3021_v61 = vld [vmem:[#allocation9 + $0x38c] ss:$16 sps:$4 sm:$0xff]   ;;  %v3016_v62 = vld [vmem:[#allocation9 + $0x380] ss:$16 sps:$4 sm:$0xff]  }
 0x26a   :  { %v1234_v5 = vpack.c.bf16 %v1230_v3, %v1230_v3  ;;  %v1236_v11 = vpack.c.bf16 %v1232_v4, %v1232_v4  ;;  %v3019_v63 = vld [vmem:[#allocation9 + $0x388] ss:$16 sps:$4 sm:$0xff]   ;;  %v3024_v0 = vld [vmem:[#allocation9 + $0x3a4] ss:$16 sps:$4 sm:$0xff]   ;;  %v3027_v1 = vld [vmem:[#allocation9 + $0x3ac] ss:$16 sps:$4 sm:$0xff]   ;;  %v416_v4 = vrot.slane %v3358_v51, %v3353_v30 }
 0x26b   :  { %v3022_v2 = vld [vmem:[#allocation9 + $0x3a0] ss:$16 sps:$4 sm:$0xff]   ;;  %v3025_v3 = vld [vmem:[#allocation9 + $0x3a8] ss:$16 sps:$4 sm:$0xff]  }
 0x26c   :  { %2059 = vmatprep.mubr.bf16.mxu0 %v1234_v5  ;;  %2141 = vmatprep.mubr.bf16.mxu1 %v1234_v5  ;;  %v3030_v5 = vld [vmem:[#allocation9 + $0x3c4] ss:$16 sps:$4 sm:$0xff]  }
 0x26d   :  { %2060 = vmatmul.mubr.bf16.vlgmr.msra.gmra.mrb[4].mxu0 %v1233_v8  ;;  %2142 = vmatmul.mubr.bf16.vlgmr.msra.gmra.mrb[12].mxu1 %v1233_v8  ;;  %v3031_v8 = vld [vmem:[#allocation9 + $0x3c8] ss:$16 sps:$4 sm:$0xff]  }
 0x26e   :  { %2069 = vmatpush1.bf16.msra.mxu0 %v2944_v6  ;;  %2151 = vmatpush1.bf16.msra.mxu1 %v2947_v7  ;;  %v3033_v6 = vld [vmem:[#allocation9 + $0x3cc] ss:$16 sps:$4 sm:$0xff]   ;;  %v3028_v7 = vld [vmem:[#allocation9 + $0x3c0] ss:$16 sps:$4 sm:$0xff]  }
 0x26f   :  { %2100 = vmatprep.mubr.bf16.mxu0 %v1236_v11  ;;  %2182 = vmatprep.mubr.bf16.mxu1 %v1236_v11  ;;  %v3039_v11 = vld [vmem:[#allocation9 + $0x3ec] ss:$16 sps:$4 sm:$0xff]  }
 0x270   :  { %2070 = vmatprep.subr.bf16.mxu0 %v2952_v9  ;;  %2152 = vmatprep.subr.bf16.mxu1 %v2955_v10  ;;  %v2606_v9 = vadd.f32 %v3366_v56, %v416_v4  ;;  %v3036_v10 = vld [vmem:[#allocation9 + $0x3e4] ss:$16 sps:$4 sm:$0xff]   ;;  %v3042_v56 = vld [vmem:[%s3406_s7 + $0x4] ss:$16 sps:$4 sm:$0xff]  }
 0x272   :  { %2071 = vmatpush1.bf16.msra.mxu0 %v2950_v12  ;;  %2153 = vmatpush1.bf16.msra.mxu1 %v2953_v13  ;;  %v3034_v12 = vld [vmem:[#allocation9 + $0x3e0] ss:$16 sps:$4 sm:$0xff]   ;;  %v3037_v13 = vld [vmem:[#allocation9 + $0x3e8] ss:$16 sps:$4 sm:$0xff]  }
 0x273   :  { %2072 = vmatprep.subr.bf16.mxu0 %v2958_v18  ;;  %2154 = vmatprep.subr.bf16.mxu1 %v2961_v19  ;;  %v1231_v18 = vmax.f32 %v2606_v9, 0.0  ;;  %v2203_v19 = vld [vmem:[%s3407_s8] sm:$0xff] }
 0x274   :  { %2207 = vperm.xlu0 %2643, %v2203_v19  }
 0x275   :  { %v1235_v51 = vpack.c.bf16 %v1231_v18, %v1231_v18 }
 0x276   :  { %2073 = vmatpush1.bf16.msra.mxu0 %v2956_v20  ;;  %2155 = vmatpush1.bf16.msra.mxu1 %v2959_v21  ;;  %v2204_v20 = vld [vmem:[%s3407_s8 + $0x8] sm:$0xff] }
 0x277   :  { %2074 = vmatprep.subr.bf16.mxu0 %v2964_v22  ;;  %2156 = vmatprep.subr.bf16.mxu1 %v2967_v23  ;;  %v1365_v21 = vld [vmem:[#allocation10] sm:$0xf] }
 0x278   :  { %2212 = vperm.xlu0 %2643, %v2204_v20   ;;  %v1370_v22 = vrot.slane %v1365_v21, %v3334_v15  ;;  %v1374_v23 = vrot.slane %v1365_v21, %v3339_v17 }
 0x27a   :  { %2075 = vmatpush1.bf16.msra.mxu0 %v2962_v24  ;;  %2157 = vmatpush1.bf16.msra.mxu1 %v2965_v26  ;;  %v1382_v24 = vrot.slane %v1365_v21, %v3346_v25 }
 0x27b   :  { %2076 = vmatprep.subr.bf16.mxu0 %v2970_v27  ;;  %2158 = vmatprep.subr.bf16.mxu1 %v2973_v28 }
 0x27e   :  { %2077 = vmatpush1.bf16.msra.mxu0 %v2968_v29  ;;  %2159 = vmatpush1.bf16.msra.mxu1 %v2971_v31 }
 0x27f   :  { %2078 = vmatprep.subr.bf16.mxu0 %v2976_v32  ;;  %2160 = vmatprep.subr.bf16.mxu1 %v2979_v33 }
 0x282   :  { %2079 = vmatpush1.bf16.msra.mxu0 %v2974_v34  ;;  %2161 = vmatpush1.bf16.msra.mxu1 %v2977_v35 }
 0x283   :  { %2080 = vmatprep.subr.bf16.mxu0 %v2982_v37  ;;  %2162 = vmatprep.subr.bf16.mxu1 %v2985_v38  ;;  %v1378_v38 = vrot.slane %v1365_v21, %v3353_v30  ;;  %v3045_v30 = vld [vmem:[%s3406_s7 + $0xc] ss:$16 sps:$4 sm:$0xff]  }
 0x286   :  { %2081 = vmatpush1.bf16.msra.mxu0 %v2980_v39  ;;  %2163 = vmatpush1.bf16.msra.mxu1 %v2983_v40 }
 0x287   :  { %2082 = vmatprep.subr.bf16.mxu0 %v2988_v14  ;;  %2164 = vmatprep.subr.bf16.mxu1 %v2991_v41 }
 0x28a   :  { %2083 = vmatpush1.bf16.msra.mxu0 %v2986_v42  ;;  %2165 = vmatpush1.bf16.msra.mxu1 %v2989_v43 }
 0x28b   :  { %2084 = vmatprep.subr.bf16.mxu0 %v2994_v44  ;;  %2166 = vmatprep.subr.bf16.mxu1 %v2997_v45  ;;  %v3040_v44 = vld [vmem:[%s3406_s7] ss:$16 sps:$4 sm:$0xff]  }
 0x28e   :  { %2085 = vmatpush1.bf16.msra.mxu0 %v2992_v16  ;;  %2167 = vmatpush1.bf16.msra.mxu1 %v2995_v46  ;;  %v3043_v16 = vld [vmem:[%s3406_s7 + $0x8] ss:$16 sps:$4 sm:$0xff]  }
 0x28f   :  { %2086 = vmatprep.subr.bf16.mxu0 %v3000_v47  ;;  %2168 = vmatprep.subr.bf16.mxu1 %v3003_v48 }
 0x292   :  { %2087 = vmatpush1.bf16.msra.mxu0 %v2998_v49  ;;  %2169 = vmatpush1.bf16.msra.mxu1 %v3001_v36 }
 0x293   :  { %2088 = vmatprep.subr.bf16.mxu0 %v3006_v50  ;;  %2170 = vmatprep.subr.bf16.mxu1 %v3009_v52 }
 0x296   :  { %2089 = vmatpush1.bf16.msra.mxu0 %v3004_v53  ;;  %2171 = vmatpush1.bf16.msra.mxu1 %v3007_v54 }
 0x297   :  { %2090 = vmatprep.subr.bf16.mxu0 %v3012_v55  ;;  %2172 = vmatprep.subr.bf16.mxu1 %v3015_v57 }
 0x29a   :  { %2091 = vmatpush1.bf16.msra.mxu0 %v3010_v58  ;;  %2173 = vmatpush1.bf16.msra.mxu1 %v3013_v59 }
 0x29b   :  { %2092 = vmatprep.subr.bf16.mxu0 %v3018_v60  ;;  %2174 = vmatprep.subr.bf16.mxu1 %v3021_v61 }
 0x29e   :  { %2093 = vmatpush1.bf16.msra.mxu0 %v3016_v62  ;;  %2175 = vmatpush1.bf16.msra.mxu1 %v3019_v63 }
 0x29f   :  { %2094 = vmatprep.subr.bf16.mxu0 %v3024_v0  ;;  %2176 = vmatprep.subr.bf16.mxu1 %v3027_v1 }
 0x2a2   :  { %2095 = vmatpush1.bf16.msra.mxu0 %v3022_v2  ;;  %2177 = vmatpush1.bf16.msra.mxu1 %v3025_v3 }
 0x2a3   :  { %2096 = vmatprep.subr.bf16.mxu0 %v3030_v5  ;;  %2178 = vmatprep.subr.bf16.mxu1 %v3033_v6 }
 0x2a6   :  { %2097 = vmatpush1.bf16.msra.mxu0 %v3028_v7  ;;  %2179 = vmatpush1.bf16.msra.mxu1 %v3031_v8 }
 0x2a7   :  { %2098 = vmatprep.subr.bf16.mxu0 %v3036_v10  ;;  %2180 = vmatprep.subr.bf16.mxu1 %v3039_v11 }
 0x2aa   :  { %2099 = vmatpush1.bf16.msra.mxu0 %v3034_v12  ;;  %2181 = vmatpush1.bf16.msra.mxu1 %v3037_v13 }
 0x2ad   :  { %2101 = vmatmul.mubr.bf16.vlgmr.msra.gmra.mrb[4].mxu0 %v1235_v51  ;;  %2183 = vmatmul.mubr.bf16.vlgmr.msra.gmra.mrb[12].mxu1 %v1235_v51 }
 0x2ae   :  { %2267 = vmatprep.mubr.bf16.mxu0 %v3042_v56 }
 0x2f3   :  { %v2208_v46 = vpop.permute.xlu0 %2207 }
 0x2f7   :  { %v2213_v36 = vpop.permute.xlu0 %2212 }
 0x380   :  { %v2102_v26 = vpop.f32.mrb[4].mxu0  ;;  %v2184_v27 = vpop.f32.mrb[12].mxu1 }
 0x381   :  { %v2608_v28 = vadd.f32 %v2102_v26, %v1370_v22  ;;  %v2104_v29 = vpop.f32.mrb[5].mxu0  ;;  %v2186_v31 = vpop.f32.mrb[13].mxu1  ;;  %v2610_v42 = vadd.f32 %v2184_v27, %v1378_v38 }
 0x382   :  { %v2609_v32 = vadd.f32 %v2104_v29, %v1374_v23  ;;  %v2611_v33 = vadd.f32 %v2186_v31, %v1382_v24  ;;  %v2106_v34 = vpop.f32.mrb[6].mxu0  ;;  %v2188_v35 = vpop.f32.mrb[14].mxu1 }
 0x383   :  { %v2191_v37 = vmax.f32 %v2608_v28, 0.0  ;;  %v2107_v39 = vpop.f32.mrb[7].mxu0  ;;  %v2189_v40 = vpop.f32.mrb[15].mxu1  ;;  %v2193_v43 = vmax.f32 %v2610_v42, 0.0 }
 0x384   :  { %v2192_v14 = vmax.f32 %v2609_v32, 0.0  ;;  %v2194_v15 = vmax.f32 %v2611_v33, 0.0 }
 0x385   :  { %v2195_v17 = vpack.c.bf16 %v2191_v37, %v2191_v37  ;;  %v2197_v45 = vpack.c.bf16 %v2193_v43, %v2193_v43 }
 0x386   :  { %v2196_v41 = vpack.c.bf16 %v2192_v14, %v2192_v14  ;;  %v2198_v25 = vpack.c.bf16 %v2194_v15, %v2194_v15 }
 0x388   :  { %2235 = vmatprep.subr.bf16.mxu0 %v2196_v41 }
 0x389   :  { %2236 = vmatpush1.bf16.xpose.msra.mxu0 %v2195_v17 }
 0x38a   :  { %2276 = vmatprep.subr.bf16.mxu0 %v2198_v25 }
 0x390   :  { %2268 = vmatmul.mubr.bf16.vlgmr.msra.gmra.mrb[8].mxu0 %v3040_v44 }
 0x391   :  { %2277 = vmatpush1.bf16.xpose.msra.mxu0 %v2197_v45  ;;  %2308 = vmatprep.mubr.bf16.mxu0 %v3045_v30 }
 0x39c   :  { %2309 = vmatmul.mubr.bf16.vlgmr.msra.gmra.mrb[8].mxu0 %v3043_v16 }
 0x46f   :  { %v2310_v47 = vpop.f32.mrb[8].mxu0 }
 0x470   :  { %v2612_v48 = vadd.f32 %v2310_v47, %v2208_v46  ;;  %v2312_v49 = vpop.f32.mrb[9].mxu0 }
 0x471   :  { %v2313_v50 = vpop.f32.mrb[10].mxu0 }
 0x472   :  { %v2602_v52 = vclamps-f32 %v2612_v48, 1.0  ;;  %v2613_v53 = vadd.f32 %v2313_v50, %v2213_v36  ;;  %v2315_v54 = vpop.f32.mrb[11].mxu0 }
 0x474   :  { %2322 = vst.msk [vmem:[%s3408_s9] sm:$0xff] %vm2321_vm1, %v2602_v52  ;;  %v2603_v55 = vclamps-f32 %v2613_v53, 1.0 }
 0x476   :  { %2323 = vst.msk [vmem:[%s3408_s9 + $0x8] sm:$0xff] %vm2321_vm1, %v2603_v55 }
 0x477   :  { %2328 = vsyncpa [#allocation3], 1 }
 0x478   :  { %2329 = vsyncpa [#allocation5], 1 }
 0x479   :  { %2330 = vsyncpa [#allocation8], 1 }
 0x47a   :  { %2331 = vsyncpa [#allocation11], 1 }

</bundles_post_ra>
